<compile_context>
chip_gen: v6e
topology: v6e:2x2x1
jax: 0.10.0
libtpu: 0.0.40
codegen_flags: <defaults>
</compile_context>

<pallas_src>
import functools

import jax
import jax.numpy as jnp
from jax import lax
from jax.experimental import pallas as pl
from jax.experimental.pallas import tpu as pltpu


_TIME_CHUNK = 16          # timesteps whose input projection is hoisted per chunk
_MAX_BATCH_TILE = 256     # batch-tile rows (MXU height on v6e/v7x)


def _round_up(n, m):
    return ((n + m - 1) // m) * m


def _gate_layout(H):
    """Return (Hs, G): lane stride of each gate and padded total gate width."""
    if H % 128 == 0:
        Hs = H                      # already lane aligned, zero waste
    elif 3 * H <= 128:
        Hs = H                      # compact: r|z|n packed into one 128-lane tile
    else:
        Hs = _round_up(H, 128)      # fall back to per-gate 128-lane alignment
    G = _round_up(3 * Hs, 128)
    return Hs, G


# ----------------------------- fused Pallas kernel -----------------------------

def _make_encoder_kernel(num_layers, T, TC, Btile, H, Hs, G):
    """Fused kernel: all GRU layers + hid2lat linear, for one batch tile.

    Ref order (per grid step):
      x_ref                              (T, Btile, Dp)   f32 time-major input tile
      per layer: w_ih (din, G) bf16, w_hh (H, G) bf16, b_i (1, G) f32, b_hn (1, H) f32
      w_lat (H, Lp) bf16, b_lat (1, Lp) f32
      z0_ref (out)                       (Btile, Lp) f32
      gi_ref  (scratch)                  (TC, Btile, G) f32   hoisted projection chunk
      seq_ref (scratch, only if L > 1)   (T, Btile, H)  f32   inter-layer sequence
    """
    n_full = T // TC
    rem = T - n_full * TC
    has_seq = num_layers > 1

    def kernel(*refs):
        x_ref = refs[0]
        layer_refs = [refs[1 + 4 * l: 1 + 4 * (l + 1)] for l in range(num_layers)]
        w_lat_ref = refs[1 + 4 * num_layers]
        b_lat_ref = refs[2 + 4 * num_layers]
        z0_ref = refs[3 + 4 * num_layers]
        gi_ref = refs[4 + 4 * num_layers]
        seq_ref = refs[5 + 4 * num_layers] if has_seq else None

        h_last = jnp.zeros((Btile, H), jnp.float32)
        for l in range(num_layers):
            w_ih_ref, w_hh_ref, b_i_ref, b_hn_ref = layer_refs[l]
            inp_ref = x_ref if l == 0 else seq_ref
            is_last = (l == num_layers - 1)
            din = inp_ref.shape[-1]

            # --- loop-invariant hoists (weights stay resident across the time loop) ---
            w_ih = w_ih_ref[...]                                   # (din, G) bf16
            w_hh = w_hh_ref[...]                                   # (H,   G) bf16
            b_i = b_i_ref[...]                                     # (1, G)  f32
            b_hn = jnp.broadcast_to(b_hn_ref[...], (Btile, H))     # (Btile, H) f32

            def run_chunk(h, t0, csize):
                # Hoisted input projection for this time chunk: ONE big matmul for
                # `csize` timesteps; only h @ W_hh stays on the serial critical path.
                xc = inp_ref[pl.ds(t0, csize)]                     # (csize, Btile, din)
                x2 = xc.reshape(csize * Btile, din).astype(jnp.bfloat16)
                gi = jnp.dot(x2, w_ih, preferred_element_type=jnp.float32) + b_i
                gi_ref[pl.ds(0, csize)] = gi.reshape(csize, Btile, G)

                for j in range(csize):                 # static unroll within chunk
                    gi_j = gi_ref[j]                                   # (Btile, G) f32
                    gh = jnp.dot(h.astype(jnp.bfloat16), w_hh,
                                 preferred_element_type=jnp.float32)   # (Btile, G) f32
                    # gate g lives at lanes [g*Hs, g*Hs + H)
                    r = jax.nn.sigmoid(gi_j[:, 0:H] + gh[:, 0:H])
                    z = jax.nn.sigmoid(gi_j[:, Hs:Hs + H] + gh[:, Hs:Hs + H])
                    n = jnp.tanh(gi_j[:, 2 * Hs:2 * Hs + H]
                                 + r * (gh[:, 2 * Hs:2 * Hs + H] + b_hn))
                    h = n + z * (h - n)                                # (1-z)*n + z*h
                    if not is_last:
                        seq_ref[t0 + j] = h            # feed next layer
                return h

            h = jnp.zeros((Btile, H), jnp.float32)
            if n_full == 1:
                h = run_chunk(h, 0, TC)                # small T: fully static
            elif n_full > 1:
                h = lax.fori_loop(
                    0, n_full,
                    lambda c, hh: run_chunk(hh, pl.multiple_of(c * TC, TC), TC),
                    h)
            if rem:
                h = run_chunk(h, n_full * TC, rem)     # static remainder chunk
            h_last = h

        # hid2lat fused into the same kernel; (Btile, Lp) is a lane-dense store.
        z0_ref[...] = (jnp.dot(h_last.astype(jnp.bfloat16), w_lat_ref[...],
                               preferred_element_type=jnp.float32) + b_lat_ref[...])

    return kernel


# ------------------------- parameter packing (padding) -------------------------

def _pack_gate_cols(w, H, Hs, G):
    """Place gate g's H columns at lanes [g*Hs, g*Hs+H); zero-pad to G lanes."""
    rows = w.shape[0]
    w3 = w.reshape(rows, 3, H)
    w3 = jnp.pad(w3, ((0, 0), (0, 0), (0, Hs - H)))
    out = w3.reshape(rows, 3 * Hs)
    return jnp.pad(out, ((0, 0), (0, G - 3 * Hs)))


def _pack_gru_layer(layer, H, Hs, G, row_pad):
    """Pack one GRU layer: bf16 weights, folded r/z biases, separate b_hn."""
    w_ih = layer["w_ih_t"]          # (din, 3H), gate order r|z|n
    w_hh = layer["w_hh_t"]          # (H, 3H)
    b_ih = layer["b_ih"]            # (1, 3H)
    b_hh = layer["b_hh"]            # (1, 3H)
    din = w_ih.shape[0]

    w_ih_p = _pack_gate_cols(jnp.pad(w_ih, ((0, row_pad - din), (0, 0))), H, Hs, G)
    w_hh_p = _pack_gate_cols(w_hh, H, Hs, G)

    # r/z gates: b_ih + b_hh folded into the hoisted projection; n gate keeps b_in
    # only (b_hn must stay inside the r*(...) term to match PyTorch GRU semantics).
    b_comb = b_ih + jnp.concatenate(
        [b_hh[:, :2 * H], jnp.zeros((1, H), b_hh.dtype)], axis=1)
    b_comb_p = _pack_gate_cols(b_comb, H, Hs, G)
    b_hn = b_hh[:, 2 * H:3 * H]                       # (1, H), f32, unpadded

    return (w_ih_p.astype(jnp.bfloat16), w_hh_p.astype(jnp.bfloat16),
            b_comb_p, b_hn)


# ------------------------------ Encoder wrapper --------------------------------

def init_encoder_params(key, input_dim, hidden_dim, latent_dim,
                        encode_with_time_dim, encoder_num_layers):
    """Deterministic synthetic parameters (uniform, like PyTorch's default init)."""
    rnn_in = input_dim + 1 if encode_with_time_dim else input_dim
    k = 1.0 / jnp.sqrt(hidden_dim)
    params = {"gru": []}
    for layer in range(encoder_num_layers):
        din = rnn_in if layer == 0 else hidden_dim
        key, k1, k2, k3, k4 = jax.random.split(key, 5)
        params["gru"].append({
            # stored transposed for (x @ W) matmuls; gate order r|z|n
            "w_ih_t": jax.random.uniform(k1, (din, 3 * hidden_dim), jnp.float32, -k, k),
            "w_hh_t": jax.random.uniform(k2, (hidden_dim, 3 * hidden_dim), jnp.float32, -k, k),
            "b_ih":   jax.random.uniform(k3, (1, 3 * hidden_dim), jnp.float32, -k, k),
            "b_hh":   jax.random.uniform(k4, (1, 3 * hidden_dim), jnp.float32, -k, k),
        })
    key, k1, k2 = jax.random.split(key, 3)
    kl = 1.0 / jnp.sqrt(hidden_dim)
    params["hid2lat_w_t"] = jax.random.uniform(
        k1, (hidden_dim, latent_dim), jnp.float32, -kl, kl)
    params["hid2lat_b"] = jax.random.uniform(
        k2, (1, latent_dim), jnp.float32, -kl, kl)
    return params


@functools.partial(jax.jit, static_argnames=("encode_with_time_dim", "reverse"))
def encoder_forward(params, x, t, *, encode_with_time_dim=True, reverse=False):
    B, T, _ = x.shape
    if encode_with_time_dim:
        t_diff = jnp.zeros_like(t).at[:, 1:].set(t[:, 1:] - t[:, :-1])  # t_diff[:,0]=0
        xt = jnp.concatenate([x, t_diff[..., None]], axis=-1)
    else:
        xt = x
    if reverse:
        xt = jnp.flip(xt, axis=1)

    seq = jnp.transpose(xt, (1, 0, 2))           # (T, B, Din) time-major
    Din = seq.shape[-1]
    H = params["gru"][0]["w_hh_t"].shape[0]
    L = params["hid2lat_w_t"].shape[1]
    num_layers = len(params["gru"])

    Hs, G = _gate_layout(H)                      # gate stride / padded gate width
    Lp = _round_up(L, 128)                       # lane-dense output store
    Dp = _round_up(Din, 128)

    Btile = min(_MAX_BATCH_TILE, _round_up(B, 8))
    Bp = _round_up(B, Btile)
    grid_b = Bp // Btile
    TC = min(T, _TIME_CHUNK)

    seq_p = jnp.pad(seq, ((0, 0), (0, Bp - B), (0, Dp - Din)))   # zeros in pads

    operands = [seq_p]
    in_specs = [pl.BlockSpec((T, Btile, Dp), lambda b: (0, b, 0))]
    flops = 0
    for l, layer in enumerate(params["gru"]):
        din = Din if l == 0 else H
        row_pad = Dp if l == 0 else H
        packed = _pack_gru_layer(layer, H, Hs, G, row_pad)
        operands.extend(packed)
        for p in packed:                          # weights: constant index_map
            in_specs.append(pl.BlockSpec(p.shape, lambda b: (0, 0)))
        flops += 2 * T * B * din * 3 * H          # hoisted input projection (true dims)
        flops += 2 * T * B * H * 3 * H            # recurrent matmuls (true dims)

    w_lat_p = jnp.pad(params["hid2lat_w_t"],
                      ((0, 0), (0, Lp - L))).astype(jnp.bfloat16)
    b_lat_p = jnp.pad(params["hid2lat_b"], ((0, 0), (0, Lp - L)))
    operands.extend([w_lat_p, b_lat_p])
    in_specs.append(pl.BlockSpec(w_lat_p.shape, lambda b: (0, 0)))
    in_specs.append(pl.BlockSpec(b_lat_p.shape, lambda b: (0, 0)))
    flops += 2 * B * H * L

    bytes_accessed = (sum(int(o.size) * o.dtype.itemsize for o in operands)
                      + Bp * Lp * 4)

    scratch = [pltpu.VMEM((TC, Btile, G), jnp.float32)]          # chunked gi
    if num_layers > 1:
        scratch.append(pltpu.VMEM((T, Btile, H), jnp.float32))   # inter-layer seq

    kernel = _make_encoder_kernel(num_layers, T, TC, Btile, H, Hs, G)
    z0_p = pl.pallas_call(
        kernel,
        out_shape=jax.ShapeDtypeStruct((Bp, Lp), jnp.float32),
        grid_spec=pltpu.PrefetchScalarGridSpec(
            num_scalar_prefetch=0,
            grid=(grid_b,),
            in_specs=in_specs,
            out_specs=pl.BlockSpec((Btile, Lp), lambda b: (b, 0)),
            scratch_shapes=scratch),
        compiler_params=pltpu.CompilerParams(
            dimension_semantics=("parallel",),
            vmem_limit_bytes=32 * 1024 * 1024),
        cost_estimate=pl.CostEstimate(
            flops=int(flops),
            transcendentals=int(num_layers * T * B * 3 * H),
            bytes_accessed=int(bytes_accessed)),
    )(*operands)

    # strip batch / lane padding; non-variational: cat(z0[:, :E], z0[:, E:]) == z0
    return z0_p[:B, :L]


# ------------------ Pure-JAX reference (same math, no Pallas) -------------------

def encoder_forward_ref(params, x, t, *, encode_with_time_dim=True, reverse=False,
                        matmul_dtype=jnp.float32):
    """PyTorch-GRU-semantics reference. matmul_dtype=bfloat16 mirrors the kernel's
    bf16 MXU operands (f32 accumulate) for a tight mechanical comparison."""
    def mm(a, w):
        return jnp.dot(a.astype(matmul_dtype), w.astype(matmul_dtype),
                       preferred_element_type=jnp.float32)

    if encode_with_time_dim:
        t_diff = jnp.zeros_like(t).at[:, 1:].set(t[:, 1:] - t[:, :-1])
        xt = jnp.concatenate([x, t_diff[..., None]], axis=-1)
    else:
        xt = x
    if reverse:
        xt = jnp.flip(xt, axis=1)
    seq = jnp.transpose(xt, (1, 0, 2))
    B = x.shape[0]
    H = params["gru"][0]["w_hh_t"].shape[0]
    h_last = jnp.zeros((B, H), jnp.float32)
    for layer in params["gru"]:
        h = jnp.zeros((B, H), jnp.float32)
        outs = []
        for ts in range(seq.shape[0]):
            gi = mm(seq[ts], layer["w_ih_t"]) + layer["b_ih"]
            gh = mm(h, layer["w_hh_t"]) + layer["b_hh"]
            i_r, i_z, i_n = gi[:, :H], gi[:, H:2 * H], gi[:, 2 * H:]
            h_r, h_z, h_n = gh[:, :H], gh[:, H:2 * H], gh[:, 2 * H:]
            r = jax.nn.sigmoid(i_r + h_r)
            z = jax.nn.sigmoid(i_z + h_z)
            n = jnp.tanh(i_n + r * h_n)
            h = (1.0 - z) * n + z * h
            outs.append(h)
        seq = jnp.stack(outs, axis=0)
        h_last = h
    return mm(h_last, params["hid2lat_w_t"]) + params["hid2lat_b"]


def _run_case(key, B, T, input_dim, hidden_dim, latent_dim, num_layers,
              encode_with_time_dim, reverse):
    kx, kt, kp = jax.random.split(key, 3)
    x = jax.random.normal(kx, (B, T, input_dim), jnp.float32)
    t = jnp.sort(jax.random.uniform(kt, (B, T), jnp.float32), axis=1)
    params = init_encoder_params(kp, input_dim, hidden_dim, latent_dim,
                                 encode_with_time_dim, num_layers)

    z0 = encoder_forward(params, x, t,
                         encode_with_time_dim=encode_with_time_dim,
                         reverse=reverse)
    z0 = jax.block_until_ready(z0)
    assert z0.shape == (B, latent_dim)

    # Tight check vs a reference that uses the same bf16 matmul operands.
    z0_bf = encoder_forward_ref(params, x, t,
                                encode_with_time_dim=encode_with_time_dim,
                                reverse=reverse, matmul_dtype=jnp.bfloat16)
    assert jnp.allclose(z0, z0_bf, atol=1e-3, rtol=1e-2), "mismatch vs bf16 reference"

    # Loose sanity check vs the pure-f32 reference (bf16 MXU operands only add
    # small rounding error at these sizes).
    z0_f32 = encoder_forward_ref(params, x, t,
                                 encode_with_time_dim=encode_with_time_dim,
                                 reverse=reverse, matmul_dtype=jnp.float32)
    assert jnp.allclose(z0, z0_f32, atol=2e-1, rtol=2e-1), "diverged from f32 reference"
    return z0


if __name__ == "__main__":
    key = jax.random.PRNGKey(0)
    k1, k2 = jax.random.split(key)

    # Case 1: small shapes consistent with the module's forward.
    # 2 GRU layers, T=8 -> single fully-unrolled time chunk, compact gate layout.
    _run_case(k1, B=2, T=8, input_dim=4, hidden_dim=32, latent_dim=16,
              num_layers=2, encode_with_time_dim=True, reverse=False)

    # Case 2: exercises the fori_loop chunk path (T=40 > chunk of 16) + remainder,
    # the single-layer (no seq scratch) path, reverse=True, no time feature, and
    # the lane-aligned gate layout (H=128).
    _run_case(k2, B=3, T=40, input_dim=6, hidden_dim=128, latent_dim=24,
              num_layers=1, encode_with_time_dim=False, reverse=True)

    print("KERNEL_OK")
</pallas_src>

<mosaic_0001>
module attributes {stable_mosaic.version = 11 : i64} {
  func.func @kernel(%arg0: i32, %arg1: memref<8x8x128xf32, #tpu.memory_space<vmem>>, %arg2: memref<128x128xbf16, #tpu.memory_space<vmem>>, %arg3: memref<32x128xbf16, #tpu.memory_space<vmem>>, %arg4: memref<1x128xf32, #tpu.memory_space<vmem>>, %arg5: memref<1x32xf32, #tpu.memory_space<vmem>>, %arg6: memref<32x128xbf16, #tpu.memory_space<vmem>>, %arg7: memref<32x128xbf16, #tpu.memory_space<vmem>>, %arg8: memref<1x128xf32, #tpu.memory_space<vmem>>, %arg9: memref<1x32xf32, #tpu.memory_space<vmem>>, %arg10: memref<32x128xbf16, #tpu.memory_space<vmem>>, %arg11: memref<1x128xf32, #tpu.memory_space<vmem>>, %arg12: memref<8x128xf32, #tpu.memory_space<vmem>>, %arg13: memref<8x8x128xf32, #tpu.memory_space<vmem>>, %arg14: memref<8x8x32xf32, #tpu.memory_space<vmem>>) attributes {dimension_semantics = [#tpu.dimension_semantics<parallel>], iteration_bounds = array<i64: 1>, scalar_prefetch = 0 : i64, scratch_operands = 2 : i64, tpu.core_type = #tpu.core_type<tc>, window_params = [{transform_indices = @transform_0, window_bounds = array<i64: 8, 8, 128>}, {pipeline_mode = #tpu.pipeline_mode<synchronous>, transform_indices = @transform_1, window_bounds = array<i64: 128, 128>}, {pipeline_mode = #tpu.pipeline_mode<synchronous>, transform_indices = @transform_2, window_bounds = array<i64: 32, 128>}, {pipeline_mode = #tpu.pipeline_mode<synchronous>, transform_indices = @transform_3, window_bounds = array<i64: 1, 128>}, {pipeline_mode = #tpu.pipeline_mode<synchronous>, transform_indices = @transform_4, window_bounds = array<i64: 1, 32>}, {pipeline_mode = #tpu.pipeline_mode<synchronous>, transform_indices = @transform_5, window_bounds = array<i64: 32, 128>}, {pipeline_mode = #tpu.pipeline_mode<synchronous>, transform_indices = @transform_6, window_bounds = array<i64: 32, 128>}, {pipeline_mode = #tpu.pipeline_mode<synchronous>, transform_indices = @transform_7, window_bounds = array<i64: 1, 128>}, {pipeline_mode = #tpu.pipeline_mode<synchronous>, transform_indices = @transform_8, window_bounds = array<i64: 1, 32>}, {pipeline_mode = #tpu.pipeline_mode<synchronous>, transform_indices = @transform_9, window_bounds = array<i64: 32, 128>}, {pipeline_mode = #tpu.pipeline_mode<synchronous>, transform_indices = @transform_10, window_bounds = array<i64: 1, 128>}, {transform_indices = @transform_11, window_bounds = array<i64: 8, 128>}]} {
    %c0 = arith.constant 0 : index
    %c0_0 = arith.constant 0 : index
    %0 = vector.load %arg2[%c0, %c0_0] : memref<128x128xbf16, #tpu.memory_space<vmem>>, vector<128x128xbf16>
    %c0_1 = arith.constant 0 : index
    %c0_2 = arith.constant 0 : index
    %1 = vector.load %arg3[%c0_1, %c0_2] : memref<32x128xbf16, #tpu.memory_space<vmem>>, vector<32x128xbf16>
    %c0_3 = arith.constant 0 : index
    %c0_4 = arith.constant 0 : index
    %2 = vector.load %arg4[%c0_3, %c0_4] : memref<1x128xf32, #tpu.memory_space<vmem>>, vector<1x128xf32>
    %c0_5 = arith.constant 0 : index
    %c0_6 = arith.constant 0 : index
    %3 = vector.load %arg5[%c0_5, %c0_6] : memref<1x32xf32, #tpu.memory_space<vmem>>, vector<1x32xf32>
    %4 = vector.shape_cast %3 : vector<1x32xf32> to vector<1x32xf32>
    %5 = vector.broadcast %4 : vector<1x32xf32> to vector<8x32xf32>
    %cst = arith.constant 0.000000e+00 : f32
    %6 = vector.broadcast %cst : f32 to vector<8x32xf32>
    %c0_7 = arith.constant 0 : index
    %c0_8 = arith.constant 0 : index
    %c0_9 = arith.constant 0 : index
    %7 = vector.load %arg1[%c0_7, %c0_8, %c0_9] : memref<8x8x128xf32, #tpu.memory_space<vmem>>, vector<8x8x128xf32>
    %8 = vector.shape_cast %7 : vector<8x8x128xf32> to vector<64x128xf32>
    %9 = arith.truncf %8 : vector<64x128xf32> to vector<64x128xbf16>
    %cst_10 = arith.constant dense<0.000000e+00> : vector<64x128xf32>
    %10 = tpu.matmul %9, %0, %cst_10 {dimension_numbers = #tpu.dot_dimension_numbers<[1], [0], [0], [1], [0, 0, 1, 1], [], []>} : vector<64x128xbf16>, vector<128x128xbf16>, vector<64x128xf32> -> vector<64x128xf32>
    %11 = vector.broadcast %2 : vector<1x128xf32> to vector<64x128xf32>
    %12 = arith.addf %10, %11 : vector<64x128xf32>
    %13 = vector.shape_cast %12 : vector<64x128xf32> to vector<8x8x128xf32>
    %c0_11 = arith.constant 0 : index
    %c0_12 = arith.constant 0 : index
    %c0_13 = arith.constant 0 : index
    %14 = vector.load %arg13[%c0_11, %c0_12, %c0_13] : memref<8x8x128xf32, #tpu.memory_space<vmem>>, vector<8x8x128xf32>
    tpu.vector_store %arg13[%c0_11, %c0_12, %c0_13], %13 {strides = array<i32>} : memref<8x8x128xf32, #tpu.memory_space<vmem>>, vector<8x8x128xf32>,
    %c0_14 = arith.constant 0 : index
    %c0_15 = arith.constant 0 : index
    %c0_16 = arith.constant 0 : index
    %15 = vector.load %arg13[%c0_14, %c0_15, %c0_16] : memref<8x8x128xf32, #tpu.memory_space<vmem>>, vector<1x8x128xf32>
    %16 = vector.shape_cast %15 : vector<1x8x128xf32> to vector<8x128xf32>
    %17 = arith.truncf %6 : vector<8x32xf32> to vector<8x32xbf16>
    %cst_17 = arith.constant dense<0.000000e+00> : vector<8x128xf32>
    %18 = tpu.matmul %17, %1, %cst_17 {dimension_numbers = #tpu.dot_dimension_numbers<[1], [0], [0], [1], [0, 0, 1, 1], [], []>} : vector<8x32xbf16>, vector<32x128xbf16>, vector<8x128xf32> -> vector<8x128xf32>
    %19 = vector.extract_strided_slice %16 {offsets = [0, 0], sizes = [8, 32], strides = [1, 1]} : vector<8x128xf32> to vector<8x32xf32>
    %20 = vector.extract_strided_slice %18 {offsets = [0, 0], sizes = [8, 32], strides = [1, 1]} : vector<8x128xf32> to vector<8x32xf32>
    %21 = arith.addf %19, %20 : vector<8x32xf32>
    %22 = arith.negf %21 : vector<8x32xf32>
    %23 = math.exp %22 : vector<8x32xf32>
    %cst_18 = arith.constant 1.000000e+00 : f32
    %24 = vector.broadcast %cst_18 : f32 to vector<8x32xf32>
    %25 = arith.addf %24, %23 : vector<8x32xf32>
    %26 = arith.divf %24, %25 : vector<8x32xf32>
    %27 = vector.extract_strided_slice %16 {offsets = [0, 32], sizes = [8, 32], strides = [1, 1]} : vector<8x128xf32> to vector<8x32xf32>
    %28 = vector.extract_strided_slice %18 {offsets = [0, 32], sizes = [8, 32], strides = [1, 1]} : vector<8x128xf32> to vector<8x32xf32>
    %29 = arith.addf %27, %28 : vector<8x32xf32>
    %30 = arith.negf %29 : vector<8x32xf32>
    %31 = math.exp %30 : vector<8x32xf32>
    %cst_19 = arith.constant 1.000000e+00 : f32
    %32 = vector.broadcast %cst_19 : f32 to vector<8x32xf32>
    %33 = arith.addf %32, %31 : vector<8x32xf32>
    %34 = arith.divf %32, %33 : vector<8x32xf32>
    %35 = vector.extract_strided_slice %16 {offsets = [0, 64], sizes = [8, 32], strides = [1, 1]} : vector<8x128xf32> to vector<8x32xf32>
    %36 = vector.extract_strided_slice %18 {offsets = [0, 64], sizes = [8, 32], strides = [1, 1]} : vector<8x128xf32> to vector<8x32xf32>
    %37 = arith.addf %36, %5 : vector<8x32xf32>
    %38 = arith.mulf %26, %37 : vector<8x32xf32>
    %39 = arith.addf %35, %38 : vector<8x32xf32>
    %40 = math.tanh %39 : vector<8x32xf32>
    %41 = arith.subf %6, %40 : vector<8x32xf32>
    %42 = arith.mulf %34, %41 : vector<8x32xf32>
    %43 = arith.addf %40, %42 : vector<8x32xf32>
    %c0_20 = arith.constant 0 : index
    %c0_21 = arith.constant 0 : index
    %c0_22 = arith.constant 0 : index
    %44 = vector.load %arg14[%c0_20, %c0_21, %c0_22] : memref<8x8x32xf32, #tpu.memory_space<vmem>>, vector<1x8x32xf32>
    %45 = vector.shape_cast %44 : vector<1x8x32xf32> to vector<8x32xf32>
    %46 = vector.shape_cast %43 : vector<8x32xf32> to vector<1x8x32xf32>
    tpu.vector_store %arg14[%c0_20, %c0_21, %c0_22], %46 {strides = array<i32>} : memref<8x8x32xf32, #tpu.memory_space<vmem>>, vector<1x8x32xf32>,
    %c1 = arith.constant 1 : index
    %c0_23 = arith.constant 0 : index
    %c0_24 = arith.constant 0 : index
    %47 = vector.load %arg13[%c1, %c0_23, %c0_24] : memref<8x8x128xf32, #tpu.memory_space<vmem>>, vector<1x8x128xf32>
    %48 = vector.shape_cast %47 : vector<1x8x128xf32> to vector<8x128xf32>
    %49 = arith.truncf %43 : vector<8x32xf32> to vector<8x32xbf16>
    %cst_25 = arith.constant dense<0.000000e+00> : vector<8x128xf32>
    %50 = tpu.matmul %49, %1, %cst_25 {dimension_numbers = #tpu.dot_dimension_numbers<[1], [0], [0], [1], [0, 0, 1, 1], [], []>} : vector<8x32xbf16>, vector<32x128xbf16>, vector<8x128xf32> -> vector<8x128xf32>
    %51 = vector.extract_strided_slice %48 {offsets = [0, 0], sizes = [8, 32], strides = [1, 1]} : vector<8x128xf32> to vector<8x32xf32>
    %52 = vector.extract_strided_slice %50 {offsets = [0, 0], sizes = [8, 32], strides = [1, 1]} : vector<8x128xf32> to vector<8x32xf32>
    %53 = arith.addf %51, %52 : vector<8x32xf32>
    %54 = arith.negf %53 : vector<8x32xf32>
    %55 = math.exp %54 : vector<8x32xf32>
    %cst_26 = arith.constant 1.000000e+00 : f32
    %56 = vector.broadcast %cst_26 : f32 to vector<8x32xf32>
    %57 = arith.addf %56, %55 : vector<8x32xf32>
    %58 = arith.divf %56, %57 : vector<8x32xf32>
    %59 = vector.extract_strided_slice %48 {offsets = [0, 32], sizes = [8, 32], strides = [1, 1]} : vector<8x128xf32> to vector<8x32xf32>
    %60 = vector.extract_strided_slice %50 {offsets = [0, 32], sizes = [8, 32], strides = [1, 1]} : vector<8x128xf32> to vector<8x32xf32>
    %61 = arith.addf %59, %60 : vector<8x32xf32>
    %62 = arith.negf %61 : vector<8x32xf32>
    %63 = math.exp %62 : vector<8x32xf32>
    %cst_27 = arith.constant 1.000000e+00 : f32
    %64 = vector.broadcast %cst_27 : f32 to vector<8x32xf32>
    %65 = arith.addf %64, %63 : vector<8x32xf32>
    %66 = arith.divf %64, %65 : vector<8x32xf32>
    %67 = vector.extract_strided_slice %48 {offsets = [0, 64], sizes = [8, 32], strides = [1, 1]} : vector<8x128xf32> to vector<8x32xf32>
    %68 = vector.extract_strided_slice %50 {offsets = [0, 64], sizes = [8, 32], strides = [1, 1]} : vector<8x128xf32> to vector<8x32xf32>
    %69 = arith.addf %68, %5 : vector<8x32xf32>
    %70 = arith.mulf %58, %69 : vector<8x32xf32>
    %71 = arith.addf %67, %70 : vector<8x32xf32>
    %72 = math.tanh %71 : vector<8x32xf32>
    %73 = arith.subf %43, %72 : vector<8x32xf32>
    %74 = arith.mulf %66, %73 : vector<8x32xf32>
    %75 = arith.addf %72, %74 : vector<8x32xf32>
    %c1_28 = arith.constant 1 : index
    %c0_29 = arith.constant 0 : index
    %c0_30 = arith.constant 0 : index
    %76 = vector.load %arg14[%c1_28, %c0_29, %c0_30] : memref<8x8x32xf32, #tpu.memory_space<vmem>>, vector<1x8x32xf32>
    %77 = vector.shape_cast %76 : vector<1x8x32xf32> to vector<8x32xf32>
    %78 = vector.shape_cast %75 : vector<8x32xf32> to vector<1x8x32xf32>
    tpu.vector_store %arg14[%c1_28, %c0_29, %c0_30], %78 {strides = array<i32>} : memref<8x8x32xf32, #tpu.memory_space<vmem>>, vector<1x8x32xf32>,
    %c2 = arith.constant 2 : index
    %c0_31 = arith.constant 0 : index
    %c0_32 = arith.constant 0 : index
    %79 = vector.load %arg13[%c2, %c0_31, %c0_32] : memref<8x8x128xf32, #tpu.memory_space<vmem>>, vector<1x8x128xf32>
    %80 = vector.shape_cast %79 : vector<1x8x128xf32> to vector<8x128xf32>
    %81 = arith.truncf %75 : vector<8x32xf32> to vector<8x32xbf16>
    %cst_33 = arith.constant dense<0.000000e+00> : vector<8x128xf32>
    %82 = tpu.matmul %81, %1, %cst_33 {dimension_numbers = #tpu.dot_dimension_numbers<[1], [0], [0], [1], [0, 0, 1, 1], [], []>} : vector<8x32xbf16>, vector<32x128xbf16>, vector<8x128xf32> -> vector<8x128xf32>
    %83 = vector.extract_strided_slice %80 {offsets = [0, 0], sizes = [8, 32], strides = [1, 1]} : vector<8x128xf32> to vector<8x32xf32>
    %84 = vector.extract_strided_slice %82 {offsets = [0, 0], sizes = [8, 32], strides = [1, 1]} : vector<8x128xf32> to vector<8x32xf32>
    %85 = arith.addf %83, %84 : vector<8x32xf32>
    %86 = arith.negf %85 : vector<8x32xf32>
    %87 = math.exp %86 : vector<8x32xf32>
    %cst_34 = arith.constant 1.000000e+00 : f32
    %88 = vector.broadcast %cst_34 : f32 to vector<8x32xf32>
    %89 = arith.addf %88, %87 : vector<8x32xf32>
    %90 = arith.divf %88, %89 : vector<8x32xf32>
    %91 = vector.extract_strided_slice %80 {offsets = [0, 32], sizes = [8, 32], strides = [1, 1]} : vector<8x128xf32> to vector<8x32xf32>
    %92 = vector.extract_strided_slice %82 {offsets = [0, 32], sizes = [8, 32], strides = [1, 1]} : vector<8x128xf32> to vector<8x32xf32>
    %93 = arith.addf %91, %92 : vector<8x32xf32>
    %94 = arith.negf %93 : vector<8x32xf32>
    %95 = math.exp %94 : vector<8x32xf32>
    %cst_35 = arith.constant 1.000000e+00 : f32
    %96 = vector.broadcast %cst_35 : f32 to vector<8x32xf32>
    %97 = arith.addf %96, %95 : vector<8x32xf32>
    %98 = arith.divf %96, %97 : vector<8x32xf32>
    %99 = vector.extract_strided_slice %80 {offsets = [0, 64], sizes = [8, 32], strides = [1, 1]} : vector<8x128xf32> to vector<8x32xf32>
    %100 = vector.extract_strided_slice %82 {offsets = [0, 64], sizes = [8, 32], strides = [1, 1]} : vector<8x128xf32> to vector<8x32xf32>
    %101 = arith.addf %100, %5 : vector<8x32xf32>
    %102 = arith.mulf %90, %101 : vector<8x32xf32>
    %103 = arith.addf %99, %102 : vector<8x32xf32>
    %104 = math.tanh %103 : vector<8x32xf32>
    %105 = arith.subf %75, %104 : vector<8x32xf32>
    %106 = arith.mulf %98, %105 : vector<8x32xf32>
    %107 = arith.addf %104, %106 : vector<8x32xf32>
    %c2_36 = arith.constant 2 : index
    %c0_37 = arith.constant 0 : index
    %c0_38 = arith.constant 0 : index
    %108 = vector.load %arg14[%c2_36, %c0_37, %c0_38] : memref<8x8x32xf32, #tpu.memory_space<vmem>>, vector<1x8x32xf32>
    %109 = vector.shape_cast %108 : vector<1x8x32xf32> to vector<8x32xf32>
    %110 = vector.shape_cast %107 : vector<8x32xf32> to vector<1x8x32xf32>
    tpu.vector_store %arg14[%c2_36, %c0_37, %c0_38], %110 {strides = array<i32>} : memref<8x8x32xf32, #tpu.memory_space<vmem>>, vector<1x8x32xf32>,
    %c3 = arith.constant 3 : index
    %c0_39 = arith.constant 0 : index
    %c0_40 = arith.constant 0 : index
    %111 = vector.load %arg13[%c3, %c0_39, %c0_40] : memref<8x8x128xf32, #tpu.memory_space<vmem>>, vector<1x8x128xf32>
    %112 = vector.shape_cast %111 : vector<1x8x128xf32> to vector<8x128xf32>
    %113 = arith.truncf %107 : vector<8x32xf32> to vector<8x32xbf16>
    %cst_41 = arith.constant dense<0.000000e+00> : vector<8x128xf32>
    %114 = tpu.matmul %113, %1, %cst_41 {dimension_numbers = #tpu.dot_dimension_numbers<[1], [0], [0], [1], [0, 0, 1, 1], [], []>} : vector<8x32xbf16>, vector<32x128xbf16>, vector<8x128xf32> -> vector<8x128xf32>
    %115 = vector.extract_strided_slice %112 {offsets = [0, 0], sizes = [8, 32], strides = [1, 1]} : vector<8x128xf32> to vector<8x32xf32>
    %116 = vector.extract_strided_slice %114 {offsets = [0, 0], sizes = [8, 32], strides = [1, 1]} : vector<8x128xf32> to vector<8x32xf32>
    %117 = arith.addf %115, %116 : vector<8x32xf32>
    %118 = arith.negf %117 : vector<8x32xf32>
    %119 = math.exp %118 : vector<8x32xf32>
    %cst_42 = arith.constant 1.000000e+00 : f32
    %120 = vector.broadcast %cst_42 : f32 to vector<8x32xf32>
    %121 = arith.addf %120, %119 : vector<8x32xf32>
    %122 = arith.divf %120, %121 : vector<8x32xf32>
    %123 = vector.extract_strided_slice %112 {offsets = [0, 32], sizes = [8, 32], strides = [1, 1]} : vector<8x128xf32> to vector<8x32xf32>
    %124 = vector.extract_strided_slice %114 {offsets = [0, 32], sizes = [8, 32], strides = [1, 1]} : vector<8x128xf32> to vector<8x32xf32>
    %125 = arith.addf %123, %124 : vector<8x32xf32>
    %126 = arith.negf %125 : vector<8x32xf32>
    %127 = math.exp %126 : vector<8x32xf32>
    %cst_43 = arith.constant 1.000000e+00 : f32
    %128 = vector.broadcast %cst_43 : f32 to vector<8x32xf32>
    %129 = arith.addf %128, %127 : vector<8x32xf32>
    %130 = arith.divf %128, %129 : vector<8x32xf32>
    %131 = vector.extract_strided_slice %112 {offsets = [0, 64], sizes = [8, 32], strides = [1, 1]} : vector<8x128xf32> to vector<8x32xf32>
    %132 = vector.extract_strided_slice %114 {offsets = [0, 64], sizes = [8, 32], strides = [1, 1]} : vector<8x128xf32> to vector<8x32xf32>
    %133 = arith.addf %132, %5 : vector<8x32xf32>
    %134 = arith.mulf %122, %133 : vector<8x32xf32>
    %135 = arith.addf %131, %134 : vector<8x32xf32>
    %136 = math.tanh %135 : vector<8x32xf32>
    %137 = arith.subf %107, %136 : vector<8x32xf32>
    %138 = arith.mulf %130, %137 : vector<8x32xf32>
    %139 = arith.addf %136, %138 : vector<8x32xf32>
    %c3_44 = arith.constant 3 : index
    %c0_45 = arith.constant 0 : index
    %c0_46 = arith.constant 0 : index
    %140 = vector.load %arg14[%c3_44, %c0_45, %c0_46] : memref<8x8x32xf32, #tpu.memory_space<vmem>>, vector<1x8x32xf32>
    %141 = vector.shape_cast %140 : vector<1x8x32xf32> to vector<8x32xf32>
    %142 = vector.shape_cast %139 : vector<8x32xf32> to vector<1x8x32xf32>
    tpu.vector_store %arg14[%c3_44, %c0_45, %c0_46], %142 {strides = array<i32>} : memref<8x8x32xf32, #tpu.memory_space<vmem>>, vector<1x8x32xf32>,
    %c4 = arith.constant 4 : index
    %c0_47 = arith.constant 0 : index
    %c0_48 = arith.constant 0 : index
    %143 = vector.load %arg13[%c4, %c0_47, %c0_48] : memref<8x8x128xf32, #tpu.memory_space<vmem>>, vector<1x8x128xf32>
    %144 = vector.shape_cast %143 : vector<1x8x128xf32> to vector<8x128xf32>
    %145 = arith.truncf %139 : vector<8x32xf32> to vector<8x32xbf16>
    %cst_49 = arith.constant dense<0.000000e+00> : vector<8x128xf32>
    %146 = tpu.matmul %145, %1, %cst_49 {dimension_numbers = #tpu.dot_dimension_numbers<[1], [0], [0], [1], [0, 0, 1, 1], [], []>} : vector<8x32xbf16>, vector<32x128xbf16>, vector<8x128xf32> -> vector<8x128xf32>
    %147 = vector.extract_strided_slice %144 {offsets = [0, 0], sizes = [8, 32], strides = [1, 1]} : vector<8x128xf32> to vector<8x32xf32>
    %148 = vector.extract_strided_slice %146 {offsets = [0, 0], sizes = [8, 32], strides = [1, 1]} : vector<8x128xf32> to vector<8x32xf32>
    %149 = arith.addf %147, %148 : vector<8x32xf32>
    %150 = arith.negf %149 : vector<8x32xf32>
    %151 = math.exp %150 : vector<8x32xf32>
    %cst_50 = arith.constant 1.000000e+00 : f32
    %152 = vector.broadcast %cst_50 : f32 to vector<8x32xf32>
    %153 = arith.addf %152, %151 : vector<8x32xf32>
    %154 = arith.divf %152, %153 : vector<8x32xf32>
    %155 = vector.extract_strided_slice %144 {offsets = [0, 32], sizes = [8, 32], strides = [1, 1]} : vector<8x128xf32> to vector<8x32xf32>
    %156 = vector.extract_strided_slice %146 {offsets = [0, 32], sizes = [8, 32], strides = [1, 1]} : vector<8x128xf32> to vector<8x32xf32>
    %157 = arith.addf %155, %156 : vector<8x32xf32>
    %158 = arith.negf %157 : vector<8x32xf32>
    %159 = math.exp %158 : vector<8x32xf32>
    %cst_51 = arith.constant 1.000000e+00 : f32
    %160 = vector.broadcast %cst_51 : f32 to vector<8x32xf32>
    %161 = arith.addf %160, %159 : vector<8x32xf32>
    %162 = arith.divf %160, %161 : vector<8x32xf32>
    %163 = vector.extract_strided_slice %144 {offsets = [0, 64], sizes = [8, 32], strides = [1, 1]} : vector<8x128xf32> to vector<8x32xf32>
    %164 = vector.extract_strided_slice %146 {offsets = [0, 64], sizes = [8, 32], strides = [1, 1]} : vector<8x128xf32> to vector<8x32xf32>
    %165 = arith.addf %164, %5 : vector<8x32xf32>
    %166 = arith.mulf %154, %165 : vector<8x32xf32>
    %167 = arith.addf %163, %166 : vector<8x32xf32>
    %168 = math.tanh %167 : vector<8x32xf32>
    %169 = arith.subf %139, %168 : vector<8x32xf32>
    %170 = arith.mulf %162, %169 : vector<8x32xf32>
    %171 = arith.addf %168, %170 : vector<8x32xf32>
    %c4_52 = arith.constant 4 : index
    %c0_53 = arith.constant 0 : index
    %c0_54 = arith.constant 0 : index
    %172 = vector.load %arg14[%c4_52, %c0_53, %c0_54] : memref<8x8x32xf32, #tpu.memory_space<vmem>>, vector<1x8x32xf32>
    %173 = vector.shape_cast %172 : vector<1x8x32xf32> to vector<8x32xf32>
    %174 = vector.shape_cast %171 : vector<8x32xf32> to vector<1x8x32xf32>
    tpu.vector_store %arg14[%c4_52, %c0_53, %c0_54], %174 {strides = array<i32>} : memref<8x8x32xf32, #tpu.memory_space<vmem>>, vector<1x8x32xf32>,
    %c5 = arith.constant 5 : index
    %c0_55 = arith.constant 0 : index
    %c0_56 = arith.constant 0 : index
    %175 = vector.load %arg13[%c5, %c0_55, %c0_56] : memref<8x8x128xf32, #tpu.memory_space<vmem>>, vector<1x8x128xf32>
    %176 = vector.shape_cast %175 : vector<1x8x128xf32> to vector<8x128xf32>
    %177 = arith.truncf %171 : vector<8x32xf32> to vector<8x32xbf16>
    %cst_57 = arith.constant dense<0.000000e+00> : vector<8x128xf32>
    %178 = tpu.matmul %177, %1, %cst_57 {dimension_numbers = #tpu.dot_dimension_numbers<[1], [0], [0], [1], [0, 0, 1, 1], [], []>} : vector<8x32xbf16>, vector<32x128xbf16>, vector<8x128xf32> -> vector<8x128xf32>
    %179 = vector.extract_strided_slice %176 {offsets = [0, 0], sizes = [8, 32], strides = [1, 1]} : vector<8x128xf32> to vector<8x32xf32>
    %180 = vector.extract_strided_slice %178 {offsets = [0, 0], sizes = [8, 32], strides = [1, 1]} : vector<8x128xf32> to vector<8x32xf32>
    %181 = arith.addf %179, %180 : vector<8x32xf32>
    %182 = arith.negf %181 : vector<8x32xf32>
    %183 = math.exp %182 : vector<8x32xf32>
    %cst_58 = arith.constant 1.000000e+00 : f32
    %184 = vector.broadcast %cst_58 : f32 to vector<8x32xf32>
    %185 = arith.addf %184, %183 : vector<8x32xf32>
    %186 = arith.divf %184, %185 : vector<8x32xf32>
    %187 = vector.extract_strided_slice %176 {offsets = [0, 32], sizes = [8, 32], strides = [1, 1]} : vector<8x128xf32> to vector<8x32xf32>
    %188 = vector.extract_strided_slice %178 {offsets = [0, 32], sizes = [8, 32], strides = [1, 1]} : vector<8x128xf32> to vector<8x32xf32>
    %189 = arith.addf %187, %188 : vector<8x32xf32>
    %190 = arith.negf %189 : vector<8x32xf32>
    %191 = math.exp %190 : vector<8x32xf32>
    %cst_59 = arith.constant 1.000000e+00 : f32
    %192 = vector.broadcast %cst_59 : f32 to vector<8x32xf32>
    %193 = arith.addf %192, %191 : vector<8x32xf32>
    %194 = arith.divf %192, %193 : vector<8x32xf32>
    %195 = vector.extract_strided_slice %176 {offsets = [0, 64], sizes = [8, 32], strides = [1, 1]} : vector<8x128xf32> to vector<8x32xf32>
    %196 = vector.extract_strided_slice %178 {offsets = [0, 64], sizes = [8, 32], strides = [1, 1]} : vector<8x128xf32> to vector<8x32xf32>
    %197 = arith.addf %196, %5 : vector<8x32xf32>
    %198 = arith.mulf %186, %197 : vector<8x32xf32>
    %199 = arith.addf %195, %198 : vector<8x32xf32>
    %200 = math.tanh %199 : vector<8x32xf32>
    %201 = arith.subf %171, %200 : vector<8x32xf32>
    %202 = arith.mulf %194, %201 : vector<8x32xf32>
    %203 = arith.addf %200, %202 : vector<8x32xf32>
    %c5_60 = arith.constant 5 : index
    %c0_61 = arith.constant 0 : index
    %c0_62 = arith.constant 0 : index
    %204 = vector.load %arg14[%c5_60, %c0_61, %c0_62] : memref<8x8x32xf32, #tpu.memory_space<vmem>>, vector<1x8x32xf32>
    %205 = vector.shape_cast %204 : vector<1x8x32xf32> to vector<8x32xf32>
    %206 = vector.shape_cast %203 : vector<8x32xf32> to vector<1x8x32xf32>
    tpu.vector_store %arg14[%c5_60, %c0_61, %c0_62], %206 {strides = array<i32>} : memref<8x8x32xf32, #tpu.memory_space<vmem>>, vector<1x8x32xf32>,
    %c6 = arith.constant 6 : index
    %c0_63 = arith.constant 0 : index
    %c0_64 = arith.constant 0 : index
    %207 = vector.load %arg13[%c6, %c0_63, %c0_64] : memref<8x8x128xf32, #tpu.memory_space<vmem>>, vector<1x8x128xf32>
    %208 = vector.shape_cast %207 : vector<1x8x128xf32> to vector<8x128xf32>
    %209 = arith.truncf %203 : vector<8x32xf32> to vector<8x32xbf16>
    %cst_65 = arith.constant dense<0.000000e+00> : vector<8x128xf32>
    %210 = tpu.matmul %209, %1, %cst_65 {dimension_numbers = #tpu.dot_dimension_numbers<[1], [0], [0], [1], [0, 0, 1, 1], [], []>} : vector<8x32xbf16>, vector<32x128xbf16>, vector<8x128xf32> -> vector<8x128xf32>
    %211 = vector.extract_strided_slice %208 {offsets = [0, 0], sizes = [8, 32], strides = [1, 1]} : vector<8x128xf32> to vector<8x32xf32>
    %212 = vector.extract_strided_slice %210 {offsets = [0, 0], sizes = [8, 32], strides = [1, 1]} : vector<8x128xf32> to vector<8x32xf32>
    %213 = arith.addf %211, %212 : vector<8x32xf32>
    %214 = arith.negf %213 : vector<8x32xf32>
    %215 = math.exp %214 : vector<8x32xf32>
    %cst_66 = arith.constant 1.000000e+00 : f32
    %216 = vector.broadcast %cst_66 : f32 to vector<8x32xf32>
    %217 = arith.addf %216, %215 : vector<8x32xf32>
    %218 = arith.divf %216, %217 : vector<8x32xf32>
    %219 = vector.extract_strided_slice %208 {offsets = [0, 32], sizes = [8, 32], strides = [1, 1]} : vector<8x128xf32> to vector<8x32xf32>
    %220 = vector.extract_strided_slice %210 {offsets = [0, 32], sizes = [8, 32], strides = [1, 1]} : vector<8x128xf32> to vector<8x32xf32>
    %221 = arith.addf %219, %220 : vector<8x32xf32>
    %222 = arith.negf %221 : vector<8x32xf32>
    %223 = math.exp %222 : vector<8x32xf32>
    %cst_67 = arith.constant 1.000000e+00 : f32
    %224 = vector.broadcast %cst_67 : f32 to vector<8x32xf32>
    %225 = arith.addf %224, %223 : vector<8x32xf32>
    %226 = arith.divf %224, %225 : vector<8x32xf32>
    %227 = vector.extract_strided_slice %208 {offsets = [0, 64], sizes = [8, 32], strides = [1, 1]} : vector<8x128xf32> to vector<8x32xf32>
    %228 = vector.extract_strided_slice %210 {offsets = [0, 64], sizes = [8, 32], strides = [1, 1]} : vector<8x128xf32> to vector<8x32xf32>
    %229 = arith.addf %228, %5 : vector<8x32xf32>
    %230 = arith.mulf %218, %229 : vector<8x32xf32>
    %231 = arith.addf %227, %230 : vector<8x32xf32>
    %232 = math.tanh %231 : vector<8x32xf32>
    %233 = arith.subf %203, %232 : vector<8x32xf32>
    %234 = arith.mulf %226, %233 : vector<8x32xf32>
    %235 = arith.addf %232, %234 : vector<8x32xf32>
    %c6_68 = arith.constant 6 : index
    %c0_69 = arith.constant 0 : index
    %c0_70 = arith.constant 0 : index
    %236 = vector.load %arg14[%c6_68, %c0_69, %c0_70] : memref<8x8x32xf32, #tpu.memory_space<vmem>>, vector<1x8x32xf32>
    %237 = vector.shape_cast %236 : vector<1x8x32xf32> to vector<8x32xf32>
    %238 = vector.shape_cast %235 : vector<8x32xf32> to vector<1x8x32xf32>
    tpu.vector_store %arg14[%c6_68, %c0_69, %c0_70], %238 {strides = array<i32>} : memref<8x8x32xf32, #tpu.memory_space<vmem>>, vector<1x8x32xf32>,
    %c7 = arith.constant 7 : index
    %c0_71 = arith.constant 0 : index
    %c0_72 = arith.constant 0 : index
    %239 = vector.load %arg13[%c7, %c0_71, %c0_72] : memref<8x8x128xf32, #tpu.memory_space<vmem>>, vector<1x8x128xf32>
    %240 = vector.shape_cast %239 : vector<1x8x128xf32> to vector<8x128xf32>
    %241 = arith.truncf %235 : vector<8x32xf32> to vector<8x32xbf16>
    %cst_73 = arith.constant dense<0.000000e+00> : vector<8x128xf32>
    %242 = tpu.matmul %241, %1, %cst_73 {dimension_numbers = #tpu.dot_dimension_numbers<[1], [0], [0], [1], [0, 0, 1, 1], [], []>} : vector<8x32xbf16>, vector<32x128xbf16>, vector<8x128xf32> -> vector<8x128xf32>
    %243 = vector.extract_strided_slice %240 {offsets = [0, 0], sizes = [8, 32], strides = [1, 1]} : vector<8x128xf32> to vector<8x32xf32>
    %244 = vector.extract_strided_slice %242 {offsets = [0, 0], sizes = [8, 32], strides = [1, 1]} : vector<8x128xf32> to vector<8x32xf32>
    %245 = arith.addf %243, %244 : vector<8x32xf32>
    %246 = arith.negf %245 : vector<8x32xf32>
    %247 = math.exp %246 : vector<8x32xf32>
    %cst_74 = arith.constant 1.000000e+00 : f32
    %248 = vector.broadcast %cst_74 : f32 to vector<8x32xf32>
    %249 = arith.addf %248, %247 : vector<8x32xf32>
    %250 = arith.divf %248, %249 : vector<8x32xf32>
    %251 = vector.extract_strided_slice %240 {offsets = [0, 32], sizes = [8, 32], strides = [1, 1]} : vector<8x128xf32> to vector<8x32xf32>
    %252 = vector.extract_strided_slice %242 {offsets = [0, 32], sizes = [8, 32], strides = [1, 1]} : vector<8x128xf32> to vector<8x32xf32>
    %253 = arith.addf %251, %252 : vector<8x32xf32>
    %254 = arith.negf %253 : vector<8x32xf32>
    %255 = math.exp %254 : vector<8x32xf32>
    %cst_75 = arith.constant 1.000000e+00 : f32
    %256 = vector.broadcast %cst_75 : f32 to vector<8x32xf32>
    %257 = arith.addf %256, %255 : vector<8x32xf32>
    %258 = arith.divf %256, %257 : vector<8x32xf32>
    %259 = vector.extract_strided_slice %240 {offsets = [0, 64], sizes = [8, 32], strides = [1, 1]} : vector<8x128xf32> to vector<8x32xf32>
    %260 = vector.extract_strided_slice %242 {offsets = [0, 64], sizes = [8, 32], strides = [1, 1]} : vector<8x128xf32> to vector<8x32xf32>
    %261 = arith.addf %260, %5 : vector<8x32xf32>
    %262 = arith.mulf %250, %261 : vector<8x32xf32>
    %263 = arith.addf %259, %262 : vector<8x32xf32>
    %264 = math.tanh %263 : vector<8x32xf32>
    %265 = arith.subf %235, %264 : vector<8x32xf32>
    %266 = arith.mulf %258, %265 : vector<8x32xf32>
    %267 = arith.addf %264, %266 : vector<8x32xf32>
    %c7_76 = arith.constant 7 : index
    %c0_77 = arith.constant 0 : index
    %c0_78 = arith.constant 0 : index
    %268 = vector.load %arg14[%c7_76, %c0_77, %c0_78] : memref<8x8x32xf32, #tpu.memory_space<vmem>>, vector<1x8x32xf32>
    %269 = vector.shape_cast %268 : vector<1x8x32xf32> to vector<8x32xf32>
    %270 = vector.shape_cast %267 : vector<8x32xf32> to vector<1x8x32xf32>
    tpu.vector_store %arg14[%c7_76, %c0_77, %c0_78], %270 {strides = array<i32>} : memref<8x8x32xf32, #tpu.memory_space<vmem>>, vector<1x8x32xf32>,
    %c0_79 = arith.constant 0 : index
    %c0_80 = arith.constant 0 : index
    %271 = vector.load %arg6[%c0_79, %c0_80] : memref<32x128xbf16, #tpu.memory_space<vmem>>, vector<32x128xbf16>
    %c0_81 = arith.constant 0 : index
    %c0_82 = arith.constant 0 : index
    %272 = vector.load %arg7[%c0_81, %c0_82] : memref<32x128xbf16, #tpu.memory_space<vmem>>, vector<32x128xbf16>
    %c0_83 = arith.constant 0 : index
    %c0_84 = arith.constant 0 : index
    %273 = vector.load %arg8[%c0_83, %c0_84] : memref<1x128xf32, #tpu.memory_space<vmem>>, vector<1x128xf32>
    %c0_85 = arith.constant 0 : index
    %c0_86 = arith.constant 0 : index
    %274 = vector.load %arg9[%c0_85, %c0_86] : memref<1x32xf32, #tpu.memory_space<vmem>>, vector<1x32xf32>
    %275 = vector.shape_cast %274 : vector<1x32xf32> to vector<1x32xf32>
    %276 = vector.broadcast %275 : vector<1x32xf32> to vector<8x32xf32>
    %cst_87 = arith.constant 0.000000e+00 : f32
    %277 = vector.broadcast %cst_87 : f32 to vector<8x32xf32>
    %c0_88 = arith.constant 0 : index
    %c0_89 = arith.constant 0 : index
    %c0_90 = arith.constant 0 : index
    %278 = vector.load %arg14[%c0_88, %c0_89, %c0_90] : memref<8x8x32xf32, #tpu.memory_space<vmem>>, vector<8x8x32xf32>
    %279 = vector.shape_cast %278 : vector<8x8x32xf32> to vector<64x32xf32>
    %280 = arith.truncf %279 : vector<64x32xf32> to vector<64x32xbf16>
    %cst_91 = arith.constant dense<0.000000e+00> : vector<64x128xf32>
    %281 = tpu.matmul %280, %271, %cst_91 {dimension_numbers = #tpu.dot_dimension_numbers<[1], [0], [0], [1], [0, 0, 1, 1], [], []>} : vector<64x32xbf16>, vector<32x128xbf16>, vector<64x128xf32> -> vector<64x128xf32>
    %282 = vector.broadcast %273 : vector<1x128xf32> to vector<64x128xf32>
    %283 = arith.addf %281, %282 : vector<64x128xf32>
    %284 = vector.shape_cast %283 : vector<64x128xf32> to vector<8x8x128xf32>
    %c0_92 = arith.constant 0 : index
    %c0_93 = arith.constant 0 : index
    %c0_94 = arith.constant 0 : index
    %285 = vector.load %arg13[%c0_92, %c0_93, %c0_94] : memref<8x8x128xf32, #tpu.memory_space<vmem>>, vector<8x8x128xf32>
    tpu.vector_store %arg13[%c0_92, %c0_93, %c0_94], %284 {strides = array<i32>} : memref<8x8x128xf32, #tpu.memory_space<vmem>>, vector<8x8x128xf32>,
    %c0_95 = arith.constant 0 : index
    %c0_96 = arith.constant 0 : index
    %c0_97 = arith.constant 0 : index
    %286 = vector.load %arg13[%c0_95, %c0_96, %c0_97] : memref<8x8x128xf32, #tpu.memory_space<vmem>>, vector<1x8x128xf32>
    %287 = vector.shape_cast %286 : vector<1x8x128xf32> to vector<8x128xf32>
    %288 = arith.truncf %277 : vector<8x32xf32> to vector<8x32xbf16>
    %cst_98 = arith.constant dense<0.000000e+00> : vector<8x128xf32>
    %289 = tpu.matmul %288, %272, %cst_98 {dimension_numbers = #tpu.dot_dimension_numbers<[1], [0], [0], [1], [0, 0, 1, 1], [], []>} : vector<8x32xbf16>, vector<32x128xbf16>, vector<8x128xf32> -> vector<8x128xf32>
    %290 = vector.extract_strided_slice %287 {offsets = [0, 0], sizes = [8, 32], strides = [1, 1]} : vector<8x128xf32> to vector<8x32xf32>
    %291 = vector.extract_strided_slice %289 {offsets = [0, 0], sizes = [8, 32], strides = [1, 1]} : vector<8x128xf32> to vector<8x32xf32>
    %292 = arith.addf %290, %291 : vector<8x32xf32>
    %293 = arith.negf %292 : vector<8x32xf32>
    %294 = math.exp %293 : vector<8x32xf32>
    %cst_99 = arith.constant 1.000000e+00 : f32
    %295 = vector.broadcast %cst_99 : f32 to vector<8x32xf32>
    %296 = arith.addf %295, %294 : vector<8x32xf32>
    %297 = arith.divf %295, %296 : vector<8x32xf32>
    %298 = vector.extract_strided_slice %287 {offsets = [0, 32], sizes = [8, 32], strides = [1, 1]} : vector<8x128xf32> to vector<8x32xf32>
    %299 = vector.extract_strided_slice %289 {offsets = [0, 32], sizes = [8, 32], strides = [1, 1]} : vector<8x128xf32> to vector<8x32xf32>
    %300 = arith.addf %298, %299 : vector<8x32xf32>
    %301 = arith.negf %300 : vector<8x32xf32>
    %302 = math.exp %301 : vector<8x32xf32>
    %cst_100 = arith.constant 1.000000e+00 : f32
    %303 = vector.broadcast %cst_100 : f32 to vector<8x32xf32>
    %304 = arith.addf %303, %302 : vector<8x32xf32>
    %305 = arith.divf %303, %304 : vector<8x32xf32>
    %306 = vector.extract_strided_slice %287 {offsets = [0, 64], sizes = [8, 32], strides = [1, 1]} : vector<8x128xf32> to vector<8x32xf32>
    %307 = vector.extract_strided_slice %289 {offsets = [0, 64], sizes = [8, 32], strides = [1, 1]} : vector<8x128xf32> to vector<8x32xf32>
    %308 = arith.addf %307, %276 : vector<8x32xf32>
    %309 = arith.mulf %297, %308 : vector<8x32xf32>
    %310 = arith.addf %306, %309 : vector<8x32xf32>
    %311 = math.tanh %310 : vector<8x32xf32>
    %312 = arith.subf %277, %311 : vector<8x32xf32>
    %313 = arith.mulf %305, %312 : vector<8x32xf32>
    %314 = arith.addf %311, %313 : vector<8x32xf32>
    %c1_101 = arith.constant 1 : index
    %c0_102 = arith.constant 0 : index
    %c0_103 = arith.constant 0 : index
    %315 = vector.load %arg13[%c1_101, %c0_102, %c0_103] : memref<8x8x128xf32, #tpu.memory_space<vmem>>, vector<1x8x128xf32>
    %316 = vector.shape_cast %315 : vector<1x8x128xf32> to vector<8x128xf32>
    %317 = arith.truncf %314 : vector<8x32xf32> to vector<8x32xbf16>
    %cst_104 = arith.constant dense<0.000000e+00> : vector<8x128xf32>
    %318 = tpu.matmul %317, %272, %cst_104 {dimension_numbers = #tpu.dot_dimension_numbers<[1], [0], [0], [1], [0, 0, 1, 1], [], []>} : vector<8x32xbf16>, vector<32x128xbf16>, vector<8x128xf32> -> vector<8x128xf32>
    %319 = vector.extract_strided_slice %316 {offsets = [0, 0], sizes = [8, 32], strides = [1, 1]} : vector<8x128xf32> to vector<8x32xf32>
    %320 = vector.extract_strided_slice %318 {offsets = [0, 0], sizes = [8, 32], strides = [1, 1]} : vector<8x128xf32> to vector<8x32xf32>
    %321 = arith.addf %319, %320 : vector<8x32xf32>
    %322 = arith.negf %321 : vector<8x32xf32>
    %323 = math.exp %322 : vector<8x32xf32>
    %cst_105 = arith.constant 1.000000e+00 : f32
    %324 = vector.broadcast %cst_105 : f32 to vector<8x32xf32>
    %325 = arith.addf %324, %323 : vector<8x32xf32>
    %326 = arith.divf %324, %325 : vector<8x32xf32>
    %327 = vector.extract_strided_slice %316 {offsets = [0, 32], sizes = [8, 32], strides = [1, 1]} : vector<8x128xf32> to vector<8x32xf32>
    %328 = vector.extract_strided_slice %318 {offsets = [0, 32], sizes = [8, 32], strides = [1, 1]} : vector<8x128xf32> to vector<8x32xf32>
    %329 = arith.addf %327, %328 : vector<8x32xf32>
    %330 = arith.negf %329 : vector<8x32xf32>
    %331 = math.exp %330 : vector<8x32xf32>
    %cst_106 = arith.constant 1.000000e+00 : f32
    %332 = vector.broadcast %cst_106 : f32 to vector<8x32xf32>
    %333 = arith.addf %332, %331 : vector<8x32xf32>
    %334 = arith.divf %332, %333 : vector<8x32xf32>
    %335 = vector.extract_strided_slice %316 {offsets = [0, 64], sizes = [8, 32], strides = [1, 1]} : vector<8x128xf32> to vector<8x32xf32>
    %336 = vector.extract_strided_slice %318 {offsets = [0, 64], sizes = [8, 32], strides = [1, 1]} : vector<8x128xf32> to vector<8x32xf32>
    %337 = arith.addf %336, %276 : vector<8x32xf32>
    %338 = arith.mulf %326, %337 : vector<8x32xf32>
    %339 = arith.addf %335, %338 : vector<8x32xf32>
    %340 = math.tanh %339 : vector<8x32xf32>
    %341 = arith.subf %314, %340 : vector<8x32xf32>
    %342 = arith.mulf %334, %341 : vector<8x32xf32>
    %343 = arith.addf %340, %342 : vector<8x32xf32>
    %c2_107 = arith.constant 2 : index
    %c0_108 = arith.constant 0 : index
    %c0_109 = arith.constant 0 : index
    %344 = vector.load %arg13[%c2_107, %c0_108, %c0_109] : memref<8x8x128xf32, #tpu.memory_space<vmem>>, vector<1x8x128xf32>
    %345 = vector.shape_cast %344 : vector<1x8x128xf32> to vector<8x128xf32>
    %346 = arith.truncf %343 : vector<8x32xf32> to vector<8x32xbf16>
    %cst_110 = arith.constant dense<0.000000e+00> : vector<8x128xf32>
    %347 = tpu.matmul %346, %272, %cst_110 {dimension_numbers = #tpu.dot_dimension_numbers<[1], [0], [0], [1], [0, 0, 1, 1], [], []>} : vector<8x32xbf16>, vector<32x128xbf16>, vector<8x128xf32> -> vector<8x128xf32>
    %348 = vector.extract_strided_slice %345 {offsets = [0, 0], sizes = [8, 32], strides = [1, 1]} : vector<8x128xf32> to vector<8x32xf32>
    %349 = vector.extract_strided_slice %347 {offsets = [0, 0], sizes = [8, 32], strides = [1, 1]} : vector<8x128xf32> to vector<8x32xf32>
    %350 = arith.addf %348, %349 : vector<8x32xf32>
    %351 = arith.negf %350 : vector<8x32xf32>
    %352 = math.exp %351 : vector<8x32xf32>
    %cst_111 = arith.constant 1.000000e+00 : f32
    %353 = vector.broadcast %cst_111 : f32 to vector<8x32xf32>
    %354 = arith.addf %353, %352 : vector<8x32xf32>
    %355 = arith.divf %353, %354 : vector<8x32xf32>
    %356 = vector.extract_strided_slice %345 {offsets = [0, 32], sizes = [8, 32], strides = [1, 1]} : vector<8x128xf32> to vector<8x32xf32>
    %357 = vector.extract_strided_slice %347 {offsets = [0, 32], sizes = [8, 32], strides = [1, 1]} : vector<8x128xf32> to vector<8x32xf32>
    %358 = arith.addf %356, %357 : vector<8x32xf32>
    %359 = arith.negf %358 : vector<8x32xf32>
    %360 = math.exp %359 : vector<8x32xf32>
    %cst_112 = arith.constant 1.000000e+00 : f32
    %361 = vector.broadcast %cst_112 : f32 to vector<8x32xf32>
    %362 = arith.addf %361, %360 : vector<8x32xf32>
    %363 = arith.divf %361, %362 : vector<8x32xf32>
    %364 = vector.extract_strided_slice %345 {offsets = [0, 64], sizes = [8, 32], strides = [1, 1]} : vector<8x128xf32> to vector<8x32xf32>
    %365 = vector.extract_strided_slice %347 {offsets = [0, 64], sizes = [8, 32], strides = [1, 1]} : vector<8x128xf32> to vector<8x32xf32>
    %366 = arith.addf %365, %276 : vector<8x32xf32>
    %367 = arith.mulf %355, %366 : vector<8x32xf32>
    %368 = arith.addf %364, %367 : vector<8x32xf32>
    %369 = math.tanh %368 : vector<8x32xf32>
    %370 = arith.subf %343, %369 : vector<8x32xf32>
    %371 = arith.mulf %363, %370 : vector<8x32xf32>
    %372 = arith.addf %369, %371 : vector<8x32xf32>
    %c3_113 = arith.constant 3 : index
    %c0_114 = arith.constant 0 : index
    %c0_115 = arith.constant 0 : index
    %373 = vector.load %arg13[%c3_113, %c0_114, %c0_115] : memref<8x8x128xf32, #tpu.memory_space<vmem>>, vector<1x8x128xf32>
    %374 = vector.shape_cast %373 : vector<1x8x128xf32> to vector<8x128xf32>
    %375 = arith.truncf %372 : vector<8x32xf32> to vector<8x32xbf16>
    %cst_116 = arith.constant dense<0.000000e+00> : vector<8x128xf32>
    %376 = tpu.matmul %375, %272, %cst_116 {dimension_numbers = #tpu.dot_dimension_numbers<[1], [0], [0], [1], [0, 0, 1, 1], [], []>} : vector<8x32xbf16>, vector<32x128xbf16>, vector<8x128xf32> -> vector<8x128xf32>
    %377 = vector.extract_strided_slice %374 {offsets = [0, 0], sizes = [8, 32], strides = [1, 1]} : vector<8x128xf32> to vector<8x32xf32>
    %378 = vector.extract_strided_slice %376 {offsets = [0, 0], sizes = [8, 32], strides = [1, 1]} : vector<8x128xf32> to vector<8x32xf32>
    %379 = arith.addf %377, %378 : vector<8x32xf32>
    %380 = arith.negf %379 : vector<8x32xf32>
    %381 = math.exp %380 : vector<8x32xf32>
    %cst_117 = arith.constant 1.000000e+00 : f32
    %382 = vector.broadcast %cst_117 : f32 to vector<8x32xf32>
    %383 = arith.addf %382, %381 : vector<8x32xf32>
    %384 = arith.divf %382, %383 : vector<8x32xf32>
    %385 = vector.extract_strided_slice %374 {offsets = [0, 32], sizes = [8, 32], strides = [1, 1]} : vector<8x128xf32> to vector<8x32xf32>
    %386 = vector.extract_strided_slice %376 {offsets = [0, 32], sizes = [8, 32], strides = [1, 1]} : vector<8x128xf32> to vector<8x32xf32>
    %387 = arith.addf %385, %386 : vector<8x32xf32>
    %388 = arith.negf %387 : vector<8x32xf32>
    %389 = math.exp %388 : vector<8x32xf32>
    %cst_118 = arith.constant 1.000000e+00 : f32
    %390 = vector.broadcast %cst_118 : f32 to vector<8x32xf32>
    %391 = arith.addf %390, %389 : vector<8x32xf32>
    %392 = arith.divf %390, %391 : vector<8x32xf32>
    %393 = vector.extract_strided_slice %374 {offsets = [0, 64], sizes = [8, 32], strides = [1, 1]} : vector<8x128xf32> to vector<8x32xf32>
    %394 = vector.extract_strided_slice %376 {offsets = [0, 64], sizes = [8, 32], strides = [1, 1]} : vector<8x128xf32> to vector<8x32xf32>
    %395 = arith.addf %394, %276 : vector<8x32xf32>
    %396 = arith.mulf %384, %395 : vector<8x32xf32>
    %397 = arith.addf %393, %396 : vector<8x32xf32>
    %398 = math.tanh %397 : vector<8x32xf32>
    %399 = arith.subf %372, %398 : vector<8x32xf32>
    %400 = arith.mulf %392, %399 : vector<8x32xf32>
    %401 = arith.addf %398, %400 : vector<8x32xf32>
    %c4_119 = arith.constant 4 : index
    %c0_120 = arith.constant 0 : index
    %c0_121 = arith.constant 0 : index
    %402 = vector.load %arg13[%c4_119, %c0_120, %c0_121] : memref<8x8x128xf32, #tpu.memory_space<vmem>>, vector<1x8x128xf32>
    %403 = vector.shape_cast %402 : vector<1x8x128xf32> to vector<8x128xf32>
    %404 = arith.truncf %401 : vector<8x32xf32> to vector<8x32xbf16>
    %cst_122 = arith.constant dense<0.000000e+00> : vector<8x128xf32>
    %405 = tpu.matmul %404, %272, %cst_122 {dimension_numbers = #tpu.dot_dimension_numbers<[1], [0], [0], [1], [0, 0, 1, 1], [], []>} : vector<8x32xbf16>, vector<32x128xbf16>, vector<8x128xf32> -> vector<8x128xf32>
    %406 = vector.extract_strided_slice %403 {offsets = [0, 0], sizes = [8, 32], strides = [1, 1]} : vector<8x128xf32> to vector<8x32xf32>
    %407 = vector.extract_strided_slice %405 {offsets = [0, 0], sizes = [8, 32], strides = [1, 1]} : vector<8x128xf32> to vector<8x32xf32>
    %408 = arith.addf %406, %407 : vector<8x32xf32>
    %409 = arith.negf %408 : vector<8x32xf32>
    %410 = math.exp %409 : vector<8x32xf32>
    %cst_123 = arith.constant 1.000000e+00 : f32
    %411 = vector.broadcast %cst_123 : f32 to vector<8x32xf32>
    %412 = arith.addf %411, %410 : vector<8x32xf32>
    %413 = arith.divf %411, %412 : vector<8x32xf32>
    %414 = vector.extract_strided_slice %403 {offsets = [0, 32], sizes = [8, 32], strides = [1, 1]} : vector<8x128xf32> to vector<8x32xf32>
    %415 = vector.extract_strided_slice %405 {offsets = [0, 32], sizes = [8, 32], strides = [1, 1]} : vector<8x128xf32> to vector<8x32xf32>
    %416 = arith.addf %414, %415 : vector<8x32xf32>
    %417 = arith.negf %416 : vector<8x32xf32>
    %418 = math.exp %417 : vector<8x32xf32>
    %cst_124 = arith.constant 1.000000e+00 : f32
    %419 = vector.broadcast %cst_124 : f32 to vector<8x32xf32>
    %420 = arith.addf %419, %418 : vector<8x32xf32>
    %421 = arith.divf %419, %420 : vector<8x32xf32>
    %422 = vector.extract_strided_slice %403 {offsets = [0, 64], sizes = [8, 32], strides = [1, 1]} : vector<8x128xf32> to vector<8x32xf32>
    %423 = vector.extract_strided_slice %405 {offsets = [0, 64], sizes = [8, 32], strides = [1, 1]} : vector<8x128xf32> to vector<8x32xf32>
    %424 = arith.addf %423, %276 : vector<8x32xf32>
    %425 = arith.mulf %413, %424 : vector<8x32xf32>
    %426 = arith.addf %422, %425 : vector<8x32xf32>
    %427 = math.tanh %426 : vector<8x32xf32>
    %428 = arith.subf %401, %427 : vector<8x32xf32>
    %429 = arith.mulf %421, %428 : vector<8x32xf32>
    %430 = arith.addf %427, %429 : vector<8x32xf32>
    %c5_125 = arith.constant 5 : index
    %c0_126 = arith.constant 0 : index
    %c0_127 = arith.constant 0 : index
    %431 = vector.load %arg13[%c5_125, %c0_126, %c0_127] : memref<8x8x128xf32, #tpu.memory_space<vmem>>, vector<1x8x128xf32>
    %432 = vector.shape_cast %431 : vector<1x8x128xf32> to vector<8x128xf32>
    %433 = arith.truncf %430 : vector<8x32xf32> to vector<8x32xbf16>
    %cst_128 = arith.constant dense<0.000000e+00> : vector<8x128xf32>
    %434 = tpu.matmul %433, %272, %cst_128 {dimension_numbers = #tpu.dot_dimension_numbers<[1], [0], [0], [1], [0, 0, 1, 1], [], []>} : vector<8x32xbf16>, vector<32x128xbf16>, vector<8x128xf32> -> vector<8x128xf32>
    %435 = vector.extract_strided_slice %432 {offsets = [0, 0], sizes = [8, 32], strides = [1, 1]} : vector<8x128xf32> to vector<8x32xf32>
    %436 = vector.extract_strided_slice %434 {offsets = [0, 0], sizes = [8, 32], strides = [1, 1]} : vector<8x128xf32> to vector<8x32xf32>
    %437 = arith.addf %435, %436 : vector<8x32xf32>
    %438 = arith.negf %437 : vector<8x32xf32>
    %439 = math.exp %438 : vector<8x32xf32>
    %cst_129 = arith.constant 1.000000e+00 : f32
    %440 = vector.broadcast %cst_129 : f32 to vector<8x32xf32>
    %441 = arith.addf %440, %439 : vector<8x32xf32>
    %442 = arith.divf %440, %441 : vector<8x32xf32>
    %443 = vector.extract_strided_slice %432 {offsets = [0, 32], sizes = [8, 32], strides = [1, 1]} : vector<8x128xf32> to vector<8x32xf32>
    %444 = vector.extract_strided_slice %434 {offsets = [0, 32], sizes = [8, 32], strides = [1, 1]} : vector<8x128xf32> to vector<8x32xf32>
    %445 = arith.addf %443, %444 : vector<8x32xf32>
    %446 = arith.negf %445 : vector<8x32xf32>
    %447 = math.exp %446 : vector<8x32xf32>
    %cst_130 = arith.constant 1.000000e+00 : f32
    %448 = vector.broadcast %cst_130 : f32 to vector<8x32xf32>
    %449 = arith.addf %448, %447 : vector<8x32xf32>
    %450 = arith.divf %448, %449 : vector<8x32xf32>
    %451 = vector.extract_strided_slice %432 {offsets = [0, 64], sizes = [8, 32], strides = [1, 1]} : vector<8x128xf32> to vector<8x32xf32>
    %452 = vector.extract_strided_slice %434 {offsets = [0, 64], sizes = [8, 32], strides = [1, 1]} : vector<8x128xf32> to vector<8x32xf32>
    %453 = arith.addf %452, %276 : vector<8x32xf32>
    %454 = arith.mulf %442, %453 : vector<8x32xf32>
    %455 = arith.addf %451, %454 : vector<8x32xf32>
    %456 = math.tanh %455 : vector<8x32xf32>
    %457 = arith.subf %430, %456 : vector<8x32xf32>
    %458 = arith.mulf %450, %457 : vector<8x32xf32>
    %459 = arith.addf %456, %458 : vector<8x32xf32>
    %c6_131 = arith.constant 6 : index
    %c0_132 = arith.constant 0 : index
    %c0_133 = arith.constant 0 : index
    %460 = vector.load %arg13[%c6_131, %c0_132, %c0_133] : memref<8x8x128xf32, #tpu.memory_space<vmem>>, vector<1x8x128xf32>
    %461 = vector.shape_cast %460 : vector<1x8x128xf32> to vector<8x128xf32>
    %462 = arith.truncf %459 : vector<8x32xf32> to vector<8x32xbf16>
    %cst_134 = arith.constant dense<0.000000e+00> : vector<8x128xf32>
    %463 = tpu.matmul %462, %272, %cst_134 {dimension_numbers = #tpu.dot_dimension_numbers<[1], [0], [0], [1], [0, 0, 1, 1], [], []>} : vector<8x32xbf16>, vector<32x128xbf16>, vector<8x128xf32> -> vector<8x128xf32>
    %464 = vector.extract_strided_slice %461 {offsets = [0, 0], sizes = [8, 32], strides = [1, 1]} : vector<8x128xf32> to vector<8x32xf32>
    %465 = vector.extract_strided_slice %463 {offsets = [0, 0], sizes = [8, 32], strides = [1, 1]} : vector<8x128xf32> to vector<8x32xf32>
    %466 = arith.addf %464, %465 : vector<8x32xf32>
    %467 = arith.negf %466 : vector<8x32xf32>
    %468 = math.exp %467 : vector<8x32xf32>
    %cst_135 = arith.constant 1.000000e+00 : f32
    %469 = vector.broadcast %cst_135 : f32 to vector<8x32xf32>
    %470 = arith.addf %469, %468 : vector<8x32xf32>
    %471 = arith.divf %469, %470 : vector<8x32xf32>
    %472 = vector.extract_strided_slice %461 {offsets = [0, 32], sizes = [8, 32], strides = [1, 1]} : vector<8x128xf32> to vector<8x32xf32>
    %473 = vector.extract_strided_slice %463 {offsets = [0, 32], sizes = [8, 32], strides = [1, 1]} : vector<8x128xf32> to vector<8x32xf32>
    %474 = arith.addf %472, %473 : vector<8x32xf32>
    %475 = arith.negf %474 : vector<8x32xf32>
    %476 = math.exp %475 : vector<8x32xf32>
    %cst_136 = arith.constant 1.000000e+00 : f32
    %477 = vector.broadcast %cst_136 : f32 to vector<8x32xf32>
    %478 = arith.addf %477, %476 : vector<8x32xf32>
    %479 = arith.divf %477, %478 : vector<8x32xf32>
    %480 = vector.extract_strided_slice %461 {offsets = [0, 64], sizes = [8, 32], strides = [1, 1]} : vector<8x128xf32> to vector<8x32xf32>
    %481 = vector.extract_strided_slice %463 {offsets = [0, 64], sizes = [8, 32], strides = [1, 1]} : vector<8x128xf32> to vector<8x32xf32>
    %482 = arith.addf %481, %276 : vector<8x32xf32>
    %483 = arith.mulf %471, %482 : vector<8x32xf32>
    %484 = arith.addf %480, %483 : vector<8x32xf32>
    %485 = math.tanh %484 : vector<8x32xf32>
    %486 = arith.subf %459, %485 : vector<8x32xf32>
    %487 = arith.mulf %479, %486 : vector<8x32xf32>
    %488 = arith.addf %485, %487 : vector<8x32xf32>
    %c7_137 = arith.constant 7 : index
    %c0_138 = arith.constant 0 : index
    %c0_139 = arith.constant 0 : index
    %489 = vector.load %arg13[%c7_137, %c0_138, %c0_139] : memref<8x8x128xf32, #tpu.memory_space<vmem>>, vector<1x8x128xf32>
    %490 = vector.shape_cast %489 : vector<1x8x128xf32> to vector<8x128xf32>
    %491 = arith.truncf %488 : vector<8x32xf32> to vector<8x32xbf16>
    %cst_140 = arith.constant dense<0.000000e+00> : vector<8x128xf32>
    %492 = tpu.matmul %491, %272, %cst_140 {dimension_numbers = #tpu.dot_dimension_numbers<[1], [0], [0], [1], [0, 0, 1, 1], [], []>} : vector<8x32xbf16>, vector<32x128xbf16>, vector<8x128xf32> -> vector<8x128xf32>
    %493 = vector.extract_strided_slice %490 {offsets = [0, 0], sizes = [8, 32], strides = [1, 1]} : vector<8x128xf32> to vector<8x32xf32>
    %494 = vector.extract_strided_slice %492 {offsets = [0, 0], sizes = [8, 32], strides = [1, 1]} : vector<8x128xf32> to vector<8x32xf32>
    %495 = arith.addf %493, %494 : vector<8x32xf32>
    %496 = arith.negf %495 : vector<8x32xf32>
    %497 = math.exp %496 : vector<8x32xf32>
    %cst_141 = arith.constant 1.000000e+00 : f32
    %498 = vector.broadcast %cst_141 : f32 to vector<8x32xf32>
    %499 = arith.addf %498, %497 : vector<8x32xf32>
    %500 = arith.divf %498, %499 : vector<8x32xf32>
    %501 = vector.extract_strided_slice %490 {offsets = [0, 32], sizes = [8, 32], strides = [1, 1]} : vector<8x128xf32> to vector<8x32xf32>
    %502 = vector.extract_strided_slice %492 {offsets = [0, 32], sizes = [8, 32], strides = [1, 1]} : vector<8x128xf32> to vector<8x32xf32>
    %503 = arith.addf %501, %502 : vector<8x32xf32>
    %504 = arith.negf %503 : vector<8x32xf32>
    %505 = math.exp %504 : vector<8x32xf32>
    %cst_142 = arith.constant 1.000000e+00 : f32
    %506 = vector.broadcast %cst_142 : f32 to vector<8x32xf32>
    %507 = arith.addf %506, %505 : vector<8x32xf32>
    %508 = arith.divf %506, %507 : vector<8x32xf32>
    %509 = vector.extract_strided_slice %490 {offsets = [0, 64], sizes = [8, 32], strides = [1, 1]} : vector<8x128xf32> to vector<8x32xf32>
    %510 = vector.extract_strided_slice %492 {offsets = [0, 64], sizes = [8, 32], strides = [1, 1]} : vector<8x128xf32> to vector<8x32xf32>
    %511 = arith.addf %510, %276 : vector<8x32xf32>
    %512 = arith.mulf %500, %511 : vector<8x32xf32>
    %513 = arith.addf %509, %512 : vector<8x32xf32>
    %514 = math.tanh %513 : vector<8x32xf32>
    %515 = arith.subf %488, %514 : vector<8x32xf32>
    %516 = arith.mulf %508, %515 : vector<8x32xf32>
    %517 = arith.addf %514, %516 : vector<8x32xf32>
    %518 = arith.truncf %517 : vector<8x32xf32> to vector<8x32xbf16>
    %c0_143 = arith.constant 0 : index
    %c0_144 = arith.constant 0 : index
    %519 = vector.load %arg10[%c0_143, %c0_144] : memref<32x128xbf16, #tpu.memory_space<vmem>>, vector<32x128xbf16>
    %cst_145 = arith.constant dense<0.000000e+00> : vector<8x128xf32>
    %520 = tpu.matmul %518, %519, %cst_145 {dimension_numbers = #tpu.dot_dimension_numbers<[1], [0], [0], [1], [0, 0, 1, 1], [], []>} : vector<8x32xbf16>, vector<32x128xbf16>, vector<8x128xf32> -> vector<8x128xf32>
    %c0_146 = arith.constant 0 : index
    %c0_147 = arith.constant 0 : index
    %521 = vector.load %arg11[%c0_146, %c0_147] : memref<1x128xf32, #tpu.memory_space<vmem>>, vector<1x128xf32>
    %522 = vector.broadcast %521 : vector<1x128xf32> to vector<8x128xf32>
    %523 = arith.addf %520, %522 : vector<8x128xf32>
    %c0_148 = arith.constant 0 : index
    %c0_149 = arith.constant 0 : index
    %524 = vector.load %arg12[%c0_148, %c0_149] : memref<8x128xf32, #tpu.memory_space<vmem>>, vector<8x128xf32>
    tpu.vector_store %arg12[%c0_148, %c0_149], %523 {strides = array<i32>} : memref<8x128xf32, #tpu.memory_space<vmem>>, vector<8x128xf32>,
    return
  }
  func.func @transform_0(%arg0: i32) -> (i32, i32, i32) {
    %c0_i32 = arith.constant 0 : i32
    %c0_i32_0 = arith.constant 0 : i32
    %c0_i32_1 = arith.constant 0 : i32
    return %c0_i32, %arg0, %c0_i32_0 : i32, i32, i32
  }
  func.func @transform_1(%arg0: i32) -> (i32, i32) {
    %c0_i32 = arith.constant 0 : i32
    %c0_i32_0 = arith.constant 0 : i32
    %c0_i32_1 = arith.constant 0 : i32
    return %c0_i32, %c0_i32_0 : i32, i32
  }
  func.func @transform_2(%arg0: i32) -> (i32, i32) {
    %c0_i32 = arith.constant 0 : i32
    %c0_i32_0 = arith.constant 0 : i32
    %c0_i32_1 = arith.constant 0 : i32
    return %c0_i32, %c0_i32_0 : i32, i32
  }
  func.func @transform_3(%arg0: i32) -> (i32, i32) {
    %c0_i32 = arith.constant 0 : i32
    %c0_i32_0 = arith.constant 0 : i32
    %c0_i32_1 = arith.constant 0 : i32
    return %c0_i32, %c0_i32_0 : i32, i32
  }
  func.func @transform_4(%arg0: i32) -> (i32, i32) {
    %c0_i32 = arith.constant 0 : i32
    %c0_i32_0 = arith.constant 0 : i32
    %c0_i32_1 = arith.constant 0 : i32
    return %c0_i32, %c0_i32_0 : i32, i32
  }
  func.func @transform_5(%arg0: i32) -> (i32, i32) {
    %c0_i32 = arith.constant 0 : i32
    %c0_i32_0 = arith.constant 0 : i32
    %c0_i32_1 = arith.constant 0 : i32
    return %c0_i32, %c0_i32_0 : i32, i32
  }
  func.func @transform_6(%arg0: i32) -> (i32, i32) {
    %c0_i32 = arith.constant 0 : i32
    %c0_i32_0 = arith.constant 0 : i32
    %c0_i32_1 = arith.constant 0 : i32
    return %c0_i32, %c0_i32_0 : i32, i32
  }
  func.func @transform_7(%arg0: i32) -> (i32, i32) {
    %c0_i32 = arith.constant 0 : i32
    %c0_i32_0 = arith.constant 0 : i32
    %c0_i32_1 = arith.constant 0 : i32
    return %c0_i32, %c0_i32_0 : i32, i32
  }
  func.func @transform_8(%arg0: i32) -> (i32, i32) {
    %c0_i32 = arith.constant 0 : i32
    %c0_i32_0 = arith.constant 0 : i32
    %c0_i32_1 = arith.constant 0 : i32
    return %c0_i32, %c0_i32_0 : i32, i32
  }
  func.func @transform_9(%arg0: i32) -> (i32, i32) {
    %c0_i32 = arith.constant 0 : i32
    %c0_i32_0 = arith.constant 0 : i32
    %c0_i32_1 = arith.constant 0 : i32
    return %c0_i32, %c0_i32_0 : i32, i32
  }
  func.func @transform_10(%arg0: i32) -> (i32, i32) {
    %c0_i32 = arith.constant 0 : i32
    %c0_i32_0 = arith.constant 0 : i32
    %c0_i32_1 = arith.constant 0 : i32
    return %c0_i32, %c0_i32_0 : i32, i32
  }
  func.func @transform_11(%arg0: i32) -> (i32, i32) {
    %c0_i32 = arith.constant 0 : i32
    %c0_i32_0 = arith.constant 0 : i32
    return %arg0, %c0_i32 : i32, i32
  }
}

</mosaic_0001>

<bundles_post_ra>
// kernel: encoder_forward.1
= control target key start
LH: loop header
LB: loop body
LE: loop exit
PB: predicated region body
PF: predicated region fallthrough
CT: control target
= control target key end

     0   :  { %v2147_v0 = vmov 0.0   ;;  %vm2148_vm0 = vmmov 0   ;;  %v2149_v7 = vmov 0   ;;  %s2150_s17 = smov 64   ;;  %s2152_s28 = smov 32   ;;  %vm218_vm1 = vcmask 261120   ;;  %s2641_s1 = inlined_call_operand.vmem [shape: bf16[128,128], index: 1, kind: input, shape index: {}]   ;;  %s2642_s2 = inlined_call_operand.vmem [shape: bf16[32,128], index: 2, kind: input, shape index: {}]   ;;  %s2643_s0 = inlined_call_operand.vmem [shape: f32[8,8,128], index: 0, kind: input, shape index: {}]   ;;  %s2644_s4 = inlined_call_operand.vmem [shape: f32[1,32], index: 4, kind: input, shape index: {}]   ;;  %s2645_s3 = inlined_call_operand.vmem [shape: f32[1,128], index: 3, kind: input, shape index: {}]   ;;  %s2646_s6 = inlined_call_operand.vmem [shape: bf16[32,128], index: 6, kind: input, shape index: {}]   ;;  %s2647_s5 = inlined_call_operand.vmem [shape: bf16[32,128], index: 5, kind: input, shape index: {}]   ;;  %s2648_s8 = inlined_call_operand.vmem [shape: f32[1,32], index: 8, kind: input, shape index: {}]   ;;  %s2649_s7 = inlined_call_operand.vmem [shape: f32[1,128], index: 7, kind: input, shape index: {}]   ;;  %s2650_s9 = inlined_call_operand.vmem [shape: bf16[32,128], index: 9, kind: input, shape index: {}]   ;;  %s2651_s10 = inlined_call_operand.vmem [shape: f32[1,128], index: 10, kind: input, shape index: {}]   ;;  %s2652_s11 = inlined_call_operand.vmem [shape: f32[8,128], index: 11, kind: output, shape index: {}]  }
   0x1   :  { %1881 = vmatprep.subr.bf16.mxu1 %v2147_v0  ;;  %v2035_v1 = vld [vmem:[%s2641_s1 + $0x38] sm:$0xff]   ;;  %1885 = vmatprep.mubr.msk.bf16.mxu1 %vm2148_vm0, %v2147_v0  ;;  %v2222_v2 = vld [vmem:[%s2642_s2 + $0x8] sm:$0xff]   ;;  %v2037_v3 = vld [vmem:[%s2641_s1 + $0x30] sm:$0xff]  }
   0x2   :  { %1857 = vmatprep.subr.bf16.mxu0 %v2035_v1  ;;  %1882 = vmatpush3.bf16.msra.mxu1 %v2222_v2  ;;  %v2231_v4 = vld [vmem:[%s2642_s2] sm:$0xff]   ;;  %v2039_v5 = vld [vmem:[%s2641_s1 + $0x28] sm:$0xff]   ;;  %v2041_v12 = vld [vmem:[%s2641_s1 + $0x18] sm:$0xff]  }
   0x3   :  { %1858 = vmatpush3.bf16.msra.mxu0 %v2035_v1  ;;  %1883 = vmatprep.subr.bf16.mxu1 %v2147_v0  ;;  %v2040_v6 = vld [vmem:[%s2641_s1 + $0x20] sm:$0xff]   ;;  %v67_v9 = vld [vmem:[%s2643_s0 + $0x8] sm:$0xff]  ;;  %v2042_v13 = vld [vmem:[%s2641_s1 + $0x10] sm:$0xff]  }
   0x4   :  { %1859 = vmatprep.subr.bf16.mxu0 %v2037_v3  ;;  %v66_v8 = vld [vmem:[%s2643_s0] sm:$0xff]  ;;  %v2043_v14 = vld [vmem:[%s2641_s1 + $0x8] sm:$0xff]   ;;  %v68_v16 = vld [vmem:[%s2643_s0 + $0x10] sm:$0xff] }
   0x5   :  { %v74_v10 = vpack.c.bf16 %v67_v9, %v66_v8  ;;  %v1732_v11 = vld [vmem:[%s2644_s4] ss:$0 sm:$0xff]  ;;  %v69_v17 = vld [vmem:[%s2643_s0 + $0x18] sm:$0xff] }
   0x6   :  { %1884 = vmatpush3.bf16.msra.mxu1 %v2231_v4  ;;  %269 = vrot.lane.b32.xlu0 %v1732_v11, %s2150_s17  ;;  %v2044_v15 = vld [vmem:[%s2641_s1] sm:$0xff]   ;;  %v75_v18 = vpack.c.bf16 %v69_v17, %v68_v16 }
   0x7   :  { %1860 = vmatpush3.bf16.msra.mxu0 %v2037_v3  ;;  %1889 = vmatprep.subr.bf16.mxu1 %v2147_v0  ;;  %v2291_v26 = vld [vmem:[%s2645_s3] ss:$0 sm:$0xff]  ;;  %s2151_s3 = smov 96  }
   0x8   :  { %1861 = vmatprep.subr.bf16.mxu0 %v2039_v5  ;;  %1873 = vmatprep.mubr.bf16.mxu0 %v74_v10 }
   0x9   :  { %1886 = vmatmul.mubr.bf16.vlgmr.msra.gmra.mxu1 %v2149_v7 }
   0xa   :  { %1890 = vmatpush3.bf16.msra.mxu1 %v2222_v2  ;;  %1893 = vmatprep.mubr.msk.bf16.mxu1 %vm2148_vm0, %v2147_v0 }
   0xb   :  { %1862 = vmatpush3.bf16.msra.mxu0 %v2039_v5  ;;  %1891 = vmatprep.subr.bf16.mxu1 %v2147_v0 }
   0xc   :  { %1863 = vmatprep.subr.bf16.mxu0 %v2040_v6 }
   0xe   :  { %1892 = vmatpush3.bf16.msra.mxu1 %v2231_v4 }
   0xf   :  { %1864 = vmatpush3.bf16.msra.mxu0 %v2040_v6  ;;  %1897 = vmatprep.subr.bf16.mxu1 %v2147_v0 }
  0x10   :  { %1865 = vmatprep.subr.bf16.mxu0 %v2041_v12 }
  0x13   :  { %1866 = vmatpush3.bf16.msra.mxu0 %v2041_v12 }
  0x14   :  { %1867 = vmatprep.subr.bf16.mxu0 %v2042_v13 }
  0x17   :  { %1868 = vmatpush3.bf16.msra.mxu0 %v2042_v13 }
  0x18   :  { %1869 = vmatprep.subr.bf16.mxu0 %v2043_v14 }
  0x1b   :  { %1870 = vmatpush3.bf16.msra.mxu0 %v2043_v14 }
  0x1c   :  { %1871 = vmatprep.subr.bf16.mxu0 %v2044_v15 }
  0x1f   :  { %1872 = vmatpush3.bf16.msra.mxu0 %v2044_v15 }
  0x20   :  { %1921 = vmatprep.subr.bf16.mxu0 %v2147_v0 }
  0x22   :  { %1874 = vmatmul.mubr.bf16.vlgmr.msra.gmra.mxu0 %v75_v18 }
  0x23   :  { %1922 = vmatpush3.bf16.msra.mxu0 %v2222_v2 }
  0x24   :  { %1923 = vmatprep.subr.bf16.mxu0 %v2147_v0 }
  0x27   :  { %1924 = vmatpush3.bf16.msra.mxu0 %v2231_v4 }
  0x28   :  { %1937 = vmatprep.subr.bf16.mxu0 %v2147_v0 }
  0x78   :  { %v2282_v19 = vpop.permute.xlu0 %269 }
  0xc9   :  { %v256_v20 = vpop.f32.mrf.mxu1 }
  0xca   :  { %v272_v21 = vadd.f32 %v2282_v19, %v256_v20 }
  0xcb   :  { %v1887_v22 = vpop.f32.mrf.mxu1 }
  0xcc   :  { %274 = vrot.lane.b32.xlu0 %v272_v21, %s2150_s17 }
  0xcd   :  { %v259_v23 = vpop.f32.mrf.mxu1 }
  0xcf   :  { %v1888_v24 = vpop.f32.mrf.mxu1 }
  0xe2   :  { %v2286_v25 = vpop.f32.mrf.mxu0 }
  0xe3   :  { %v175_v16 = vadd.f32 %v2286_v25, %v2291_v26 }
  0xe4   :  { %v166_v27 = vpop.f32.mrf.mxu0 }
  0xe5   :  { %v167_v28 = vadd.f32 %v2291_v26, %v166_v27 }
  0xe6   :  { %v2311_v51 = vpop.f32.mrf.mxu0 }
  0xe7   :  { %v262_v29 = vadd.f32 %v256_v20, %v167_v28 }
  0xe8   :  { %v169_v52 = vpop.f32.mrf.mxu0 }
  0xe9   :  { %v1744_v30 = vmul.f32 -1.442695, %v262_v29  ;;  %v170_v53 = vadd.f32 %v2291_v26, %v169_v52 }
  0xeb   :  { %2051 = vpow2.f32 %v1744_v30 }
  0xf8   :  { %v2052_v31 = vpop.eup %2051 }
  0xf9   :  { %v266_v32 = vadd.f32 1.0, %v2052_v31 }
  0xfb   :  { %2053 = vrcp.f32 %v266_v32 }
 0x108   :  { %v2054_v33 = vpop.eup %2053 }
 0x13e   :  { %v275_v34 = vpop.permute.xlu0 %274 }
 0x13f   :  { %v277_v35 = vmul.f32 %v2054_v33, %v275_v34 }
 0x141   :  { %279 = vrot.lane.b32.xlu1 %v277_v35, %s2150_s17 }
 0x1b3   :  { %v280_v36 = vpop.permute.xlu1 %279 }
 0x1b4   :  { %v282_v37 = vadd.f32 %v280_v36, %v167_v28 }
 0x1b6   :  { %2055 = vtanh.f32 %v282_v37 }
 0x1c3   :  { %v2056_v38 = vpop.eup %2055 }
 0x1c4   :  { %v284_v39 = vsub.f32 0.0, %v2056_v38 }
 0x1c6   :  { %286 = vrot.lane.b32.xlu1 %v284_v39, %s2151_s3 }
 0x238   :  { %v287_v40 = vpop.permute.xlu1 %286 }
 0x239   :  { %v289_v41 = vmul.f32 %v2054_v33, %v287_v40 }
 0x23b   :  { %291 = vrot.lane.b32.xlu0 %v289_v41, %s2152_s28  ;;  %v178_v41 = vadd.f32 %v2311_v51, %v2291_v26  ;;  %v70_v51 = vld [vmem:[%s2643_s0 + $0x20] sm:$0xff] }
 0x2ad   :  { %v292_v42 = vpop.permute.xlu0 %291 }
 0x2ae   :  { %v2297_v43 = vadd.f32 %v2056_v38, %v292_v42 }
 0x2b0   :  { %v302_v44 = vpack.c.bf16 %v2297_v43, %v2297_v43 }
 0x2b2   :  { %304 = vrot.lane.b32.xlu1 %v302_v44, %s2150_s17 }
 0x324   :  { %v305_v45 = vpop.permute.xlu1 %304 }
 0x325   :  { %1894 = vmatmul.mubr.msk.bf16.vlgmr.msra.gmra.mxu1 %vm218_vm1, %v305_v45 }
 0x326   :  { %1898 = vmatpush3.bf16.msra.mxu1 %v2222_v2  ;;  %1901 = vmatprep.mubr.msk.bf16.mxu1 %vm2148_vm0, %v2147_v0 }
 0x327   :  { %1899 = vmatprep.subr.bf16.mxu1 %v2147_v0 }
 0x32a   :  { %1900 = vmatpush3.bf16.msra.mxu1 %v2231_v4 }
 0x32b   :  { %1905 = vmatprep.subr.bf16.mxu1 %v2147_v0 }
 0x3e5   :  { %v343_v46 = vpop.f32.mrf.mxu1 }
 0x3e6   :  { %v356_v47 = vadd.f32 %v343_v46, %v2282_v19  ;;  %v349_v54 = vadd.f32 %v343_v46, %v170_v53 }
 0x3e7   :  { %v1895_v48 = vpop.f32.mrf.mxu1 }
 0x3e8   :  { %358 = vrot.lane.b32.xlu0 %v356_v47, %s2150_s17  ;;  %v1746_v55 = vmul.f32 -1.442695, %v349_v54 }
 0x3e9   :  { %v346_v49 = vpop.f32.mrf.mxu1 }
 0x3ea   :  { %2057 = vpow2.f32 %v1746_v55  ;;  %v71_v55 = vld [vmem:[%s2643_s0 + $0x28] sm:$0xff] }
 0x3eb   :  { %v1896_v50 = vpop.f32.mrf.mxu1 }
 0x3f7   :  { %v2058_v56 = vpop.eup %2057 }
 0x3f8   :  { %v353_v57 = vadd.f32 1.0, %v2058_v56  ;;  %v72_v56 = vld [vmem:[%s2643_s0 + $0x30] sm:$0xff] }
 0x3fa   :  { %2059 = vrcp.f32 %v353_v57  ;;  %v76_v57 = vpack.c.bf16 %v71_v55, %v70_v51 }
 0x3fc   :  { %1877 = vmatprep.mubr.bf16.mxu0 %v76_v57 }
 0x407   :  { %v2060_v58 = vpop.eup %2059 }
 0x45a   :  { %v359_v59 = vpop.permute.xlu0 %358 }
 0x45b   :  { %v361_v60 = vmul.f32 %v2060_v58, %v359_v59 }
 0x45d   :  { %363 = vrot.lane.b32.xlu1 %v361_v60, %s2150_s17 }
 0x4cf   :  { %v364_v61 = vpop.permute.xlu1 %363 }
 0x4d0   :  { %v366_v62 = vadd.f32 %v364_v61, %v170_v53 }
 0x4d2   :  { %2061 = vtanh.f32 %v366_v62 }
 0x4df   :  { %v2062_v63 = vpop.eup %2061 }
 0x4e0   :  { %v368_v1 = vsub.f32 %v2297_v43, %v2062_v63 }
 0x4e2   :  { %370 = vrot.lane.b32.xlu0 %v368_v1, %s2151_s3 }
 0x554   :  { %v371_v3 = vpop.permute.xlu0 %370 }
 0x555   :  { %v373_v5 = vmul.f32 %v2060_v58, %v371_v3  ;;  %v73_v58 = vld [vmem:[%s2643_s0 + $0x38] sm:$0xff] }
 0x556   :  { %v77_v59 = vpack.c.bf16 %v73_v58, %v72_v56 }
 0x557   :  { %375 = vrot.lane.b32.xlu1 %v373_v5, %s2152_s28 }
 0x558   :  { %1878 = vmatmul.mubr.bf16.gmra.mxu0 %v77_v59 }
 0x559   :  { %1925 = vmatprep.mubr.msk.bf16.mxu0 %vm2148_vm0, %v2147_v0 }
 0x5c9   :  { %v376_v6 = vpop.permute.xlu1 %375 }
 0x5ca   :  { %v2318_v8 = vadd.f32 %v2062_v63, %v376_v6 }
 0x5cc   :  { %v387_v9 = vpack.c.bf16 %v2318_v8, %v2318_v8 }
 0x5ce   :  { %389 = vrot.lane.b32.xlu0 %v387_v9, %s2150_s17 }
 0x640   :  { %v390_v10 = vpop.permute.xlu0 %389 }
 0x641   :  { %1902 = vmatmul.mubr.msk.bf16.vlgmr.msra.gmra.mxu1 %vm218_vm1, %v390_v10 }
 0x642   :  { %1906 = vmatpush3.bf16.msra.mxu1 %v2222_v2  ;;  %1909 = vmatprep.mubr.msk.bf16.mxu1 %vm2148_vm0, %v2147_v0 }
 0x643   :  { %1907 = vmatprep.subr.bf16.mxu1 %v2147_v0 }
 0x646   :  { %1908 = vmatpush3.bf16.msra.mxu1 %v2231_v4 }
 0x647   :  { %1913 = vmatprep.subr.bf16.mxu1 %v2147_v0 }
 0x701   :  { %v428_v11 = vpop.f32.mrf.mxu1 }
 0x702   :  { %v441_v12 = vadd.f32 %v428_v11, %v2282_v19  ;;  %v434_v17 = vadd.f32 %v428_v11, %v175_v16 }
 0x703   :  { %v1903_v13 = vpop.f32.mrf.mxu1 }
 0x704   :  { %443 = vrot.lane.b32.xlu1 %v441_v12, %s2150_s17  ;;  %v1748_v18 = vmul.f32 -1.442695, %v434_v17  ;;  %v2385_v12 = vpop.f32.mrf.mxu0 }
 0x705   :  { %v431_v14 = vpop.f32.mrf.mxu1 }
 0x706   :  { %2063 = vpow2.f32 %v1748_v18  ;;  %v182_v13 = vpop.f32.mrf.mxu0 }
 0x707   :  { %v1904_v15 = vpop.f32.mrf.mxu1  ;;  %v183_v14 = vadd.f32 %v2291_v26, %v182_v13 }
 0x713   :  { %v2064_v20 = vpop.eup %2063 }
 0x714   :  { %v438_v21 = vadd.f32 1.0, %v2064_v20 }
 0x716   :  { %2065 = vrcp.f32 %v438_v21 }
 0x723   :  { %v2066_v22 = vpop.eup %2065 }
 0x776   :  { %v444_v23 = vpop.permute.xlu1 %443 }
 0x777   :  { %v446_v24 = vmul.f32 %v2066_v22, %v444_v23 }
 0x779   :  { %448 = vrot.lane.b32.xlu0 %v446_v24, %s2150_s17 }
 0x7eb   :  { %v449_v27 = vpop.permute.xlu0 %448 }
 0x7ec   :  { %v451_v28 = vadd.f32 %v449_v27, %v175_v16 }
 0x7ee   :  { %2067 = vtanh.f32 %v451_v28 }
 0x7fb   :  { %v2068_v29 = vpop.eup %2067 }
 0x7fc   :  { %v453_v30 = vsub.f32 %v2318_v8, %v2068_v29 }
 0x7fe   :  { %455 = vrot.lane.b32.xlu1 %v453_v30, %s2151_s3 }
 0x870   :  { %v456_v25 = vpop.permute.xlu1 %455 }
 0x871   :  { %v458_v31 = vmul.f32 %v2066_v22, %v456_v25 }
 0x873   :  { %460 = vrot.lane.b32.xlu0 %v458_v31, %s2152_s28 }
 0x8e5   :  { %v461_v32 = vpop.permute.xlu0 %460 }
 0x8e6   :  { %v2338_v33 = vadd.f32 %v2068_v29, %v461_v32 }
 0x8e8   :  { %v472_v34 = vpack.c.bf16 %v2338_v33, %v2338_v33 }
 0x8ea   :  { %474 = vrot.lane.b32.xlu1 %v472_v34, %s2150_s17 }
 0x95c   :  { %v475_v35 = vpop.permute.xlu1 %474 }
 0x95d   :  { %1910 = vmatmul.mubr.msk.bf16.vlgmr.msra.gmra.mxu1 %vm218_vm1, %v475_v35  ;;  %v2404_v35 = vpop.f32.mrf.mxu0 }
 0x95e   :  { %1914 = vmatpush3.bf16.msra.mxu1 %v2222_v2  ;;  %1917 = vmatprep.mubr.msk.bf16.mxu1 %vm2148_vm0, %v2147_v0 }
 0x95f   :  { %1915 = vmatprep.subr.bf16.mxu1 %v2147_v0 }
 0x962   :  { %1916 = vmatpush3.bf16.msra.mxu1 %v2231_v4 }
 0x963   :  { %1929 = vmatprep.subr.bf16.mxu1 %v2147_v0 }
 0xa1d   :  { %v513_v36 = vpop.f32.mrf.mxu1 }
 0xa1e   :  { %v526_v37 = vadd.f32 %v513_v36, %v2282_v19  ;;  %v519_v42 = vadd.f32 %v513_v36, %v178_v41  ;;  %v185_v36 = vpop.f32.mrf.mxu0 }
 0xa1f   :  { %v1911_v38 = vpop.f32.mrf.mxu1 }
 0xa20   :  { %528 = vrot.lane.b32.xlu0 %v526_v37, %s2150_s17  ;;  %v1750_v44 = vmul.f32 -1.442695, %v519_v42 }
 0xa21   :  { %v516_v39 = vpop.f32.mrf.mxu1 }
 0xa22   :  { %2069 = vpow2.f32 %v1750_v44 }
 0xa23   :  { %v1912_v40 = vpop.f32.mrf.mxu1 }
 0xa2f   :  { %v2070_v45 = vpop.eup %2069 }
 0xa30   :  { %v523_v46 = vadd.f32 1.0, %v2070_v45 }
 0xa32   :  { %2071 = vrcp.f32 %v523_v46 }
 0xa3f   :  { %v2072_v47 = vpop.eup %2071 }
 0xa92   :  { %v529_v48 = vpop.permute.xlu0 %528 }
 0xa93   :  { %v531_v49 = vmul.f32 %v2072_v47, %v529_v48 }
 0xa95   :  { %533 = vrot.lane.b32.xlu1 %v531_v49, %s2150_s17 }
 0xb07   :  { %v534_v50 = vpop.permute.xlu1 %533 }
 0xb08   :  { %v536_v52 = vadd.f32 %v534_v50, %v178_v41  ;;  %v186_v41 = vadd.f32 %v2291_v26, %v185_v36 }
 0xb0a   :  { %2073 = vtanh.f32 %v536_v52 }
 0xb17   :  { %v2074_v53 = vpop.eup %2073 }
 0xb18   :  { %v538_v54 = vsub.f32 %v2338_v33, %v2074_v53 }
 0xb1a   :  { %540 = vrot.lane.b32.xlu0 %v538_v54, %s2151_s3 }
 0xb8c   :  { %v541_v60 = vpop.permute.xlu0 %540 }
 0xb8d   :  { %v543_v61 = vmul.f32 %v2072_v47, %v541_v60 }
 0xb8f   :  { %545 = vrot.lane.b32.xlu1 %v543_v61, %s2152_s28 }
 0xc01   :  { %v546_v62 = vpop.permute.xlu1 %545 }
 0xc02   :  { %v2372_v63 = vadd.f32 %v2074_v53, %v546_v62 }
 0xc04   :  { %v557_v1 = vpack.c.bf16 %v2372_v63, %v2372_v63 }
 0xc06   :  { %559 = vrot.lane.b32.xlu0 %v557_v1, %s2150_s17 }
 0xc78   :  { %v560_v3 = vpop.permute.xlu0 %559 }
 0xc79   :  { %1918 = vmatmul.mubr.msk.bf16.vlgmr.msra.gmra.mxu1 %vm218_vm1, %v560_v3  ;;  %v191_v3 = vadd.f32 %v2385_v12, %v2291_v26 }
 0xc7a   :  { %1930 = vmatpush3.bf16.msra.mxu1 %v2222_v2  ;;  %1933 = vmatprep.mubr.msk.bf16.mxu1 %vm2148_vm0, %v2147_v0 }
 0xc7b   :  { %1931 = vmatprep.subr.bf16.mxu1 %v2147_v0 }
 0xc7e   :  { %1932 = vmatpush3.bf16.msra.mxu1 %v2231_v4 }
 0xd39   :  { %v598_v5 = vpop.f32.mrf.mxu1 }
 0xd3a   :  { %v611_v6 = vadd.f32 %v598_v5, %v2282_v19  ;;  %v604_v15 = vadd.f32 %v598_v5, %v183_v14 }
 0xd3b   :  { %v1919_v9 = vpop.f32.mrf.mxu1 }
 0xd3c   :  { %613 = vrot.lane.b32.xlu1 %v611_v6, %s2150_s17  ;;  %v1752_v16 = vmul.f32 -1.442695, %v604_v15 }
 0xd3d   :  { %v601_v10 = vpop.f32.mrf.mxu1 }
 0xd3e   :  { %2075 = vpow2.f32 %v1752_v16 }
 0xd3f   :  { %v1920_v11 = vpop.f32.mrf.mxu1 }
 0xd4b   :  { %v2076_v17 = vpop.eup %2075 }
 0xd4c   :  { %v608_v18 = vadd.f32 1.0, %v2076_v17 }
 0xd4e   :  { %2077 = vrcp.f32 %v608_v18 }
 0xd5b   :  { %v2078_v20 = vpop.eup %2077 }
 0xdae   :  { %v614_v21 = vpop.permute.xlu1 %613 }
 0xdaf   :  { %v616_v22 = vmul.f32 %v2078_v20, %v614_v21 }
 0xdb1   :  { %618 = vrot.lane.b32.xlu0 %v616_v22, %s2150_s17  ;;  %v2047_v22 = vld [vmem:[%s2647_s5 + $0x8] sm:$0xff]  }
 0xdb2   :  { %1945 = vmatprep.subr.bf16.mxu1 %v2047_v22 }
 0xe23   :  { %v619_v23 = vpop.permute.xlu0 %618 }
 0xe24   :  { %v621_v24 = vadd.f32 %v619_v23, %v183_v14 }
 0xe26   :  { %2079 = vtanh.f32 %v621_v24  ;;  %v2048_v24 = vld [vmem:[%s2647_s5] sm:$0xff]  }
 0xe33   :  { %v2080_v27 = vpop.eup %2079 }
 0xe34   :  { %v623_v28 = vsub.f32 %v2372_v63, %v2080_v27 }
 0xe36   :  { %625 = vrot.lane.b32.xlu1 %v623_v28, %s2151_s3  ;;  %v1759_v28 = vld [vmem:[%s2648_s8] ss:$0 sm:$0xff] }
 0xea8   :  { %v626_v29 = vpop.permute.xlu1 %625 }
 0xea9   :  { %v628_v30 = vmul.f32 %v2078_v20, %v626_v29  ;;  %v2456_v29 = vld [vmem:[%s2646_s6 + $0x8] sm:$0xff]  }
 0xeab   :  { %630 = vrot.lane.b32.xlu0 %v628_v30, %s2152_s28 }
 0xf1d   :  { %v631_v25 = vpop.permute.xlu0 %630 }
 0xf1e   :  { %v2392_v31 = vadd.f32 %v2080_v27, %v631_v25 }
 0xf20   :  { %v642_v32 = vpack.c.bf16 %v2392_v31, %v2392_v31 }
 0xf22   :  { %644 = vrot.lane.b32.xlu1 %v642_v32, %s2150_s17 }
 0xf94   :  { %v645_v34 = vpop.permute.xlu1 %644 }
 0xf95   :  { %1926 = vmatmul.mubr.msk.bf16.vlgmr.msra.gmra.mxu0 %vm218_vm1, %v645_v34 }
 0xf96   :  { %1938 = vmatpush3.bf16.msra.mxu0 %v2222_v2  ;;  %1941 = vmatprep.mubr.msk.bf16.mxu0 %vm2148_vm0, %v2147_v0 }
 0xf97   :  { %1939 = vmatprep.subr.bf16.mxu0 %v2147_v0 }
 0xf9a   :  { %1940 = vmatpush3.bf16.msra.mxu0 %v2231_v4 }
 0xf9b   :  { %1957 = vmatprep.subr.bf16.mxu0 %v2147_v0 }
0x1055   :  { %v683_v37 = vpop.f32.mrf.mxu0 }
0x1056   :  { %v696_v38 = vadd.f32 %v683_v37, %v2282_v19  ;;  %v689_v42 = vadd.f32 %v683_v37, %v186_v41 }
0x1057   :  { %v1927_v39 = vpop.f32.mrf.mxu0 }
0x1058   :  { %698 = vrot.lane.b32.xlu0 %v696_v38, %s2150_s17  ;;  %v1754_v44 = vmul.f32 -1.442695, %v689_v42 }
0x1059   :  { %v686_v40 = vpop.f32.mrf.mxu0 }
0x105a   :  { %2081 = vpow2.f32 %v1754_v44 }
0x105b   :  { %v1928_v2 = vpop.f32.mrf.mxu0 }
0x1067   :  { %v2082_v45 = vpop.eup %2081 }
0x1068   :  { %v693_v4 = vadd.f32 1.0, %v2082_v45 }
0x106a   :  { %2083 = vrcp.f32 %v693_v4 }
0x1077   :  { %v2084_v46 = vpop.eup %2083 }
0x10ca   :  { %v699_v47 = vpop.permute.xlu0 %698 }
0x10cb   :  { %v701_v48 = vmul.f32 %v2084_v46, %v699_v47 }
0x10cd   :  { %703 = vrot.lane.b32.xlu1 %v701_v48, %s2150_s17 }
0x113f   :  { %v704_v49 = vpop.permute.xlu1 %703 }
0x1140   :  { %v706_v50 = vadd.f32 %v704_v49, %v186_v41 }
0x1142   :  { %2085 = vtanh.f32 %v706_v50  ;;  %v2494_v50 = vld [vmem:[%s2649_s7] ss:$0 sm:$0xff] }
0x114f   :  { %v2086_v52 = vpop.eup %2085 }
0x1150   :  { %v708_v53 = vsub.f32 %v2392_v31, %v2086_v52 }
0x1152   :  { %710 = vrot.lane.b32.xlu0 %v708_v53, %s2151_s3 }
0x11c4   :  { %v711_v54 = vpop.permute.xlu0 %710 }
0x11c5   :  { %v713_v51 = vmul.f32 %v2084_v46, %v711_v54 }
0x11c7   :  { %715 = vrot.lane.b32.xlu1 %v713_v51, %s2152_s28 }
0x1239   :  { %v716_v55 = vpop.permute.xlu1 %715 }
0x123a   :  { %v2413_v56 = vadd.f32 %v2086_v52, %v716_v55 }
0x123c   :  { %v727_v57 = vpack.c.bf16 %v2413_v56, %v2413_v56 }
0x123e   :  { %729 = vrot.lane.b32.xlu0 %v727_v57, %s2150_s17 }
0x12b0   :  { %v730_v58 = vpop.permute.xlu0 %729 }
0x12b1   :  { %1934 = vmatmul.mubr.msk.bf16.vlgmr.msra.gmra.mxu1 %vm218_vm1, %v730_v58 }
0x12b2   :  { %1946 = vmatpush3.bf16.msra.mxu1 %v2047_v22 }
0x12b3   :  { %1947 = vmatprep.subr.bf16.mxu1 %v2048_v24 }
0x12b6   :  { %1948 = vmatpush3.bf16.msra.mxu1 %v2048_v24 }
0x12b7   :  { %1973 = vmatprep.subr.bf16.mxu1 %v2147_v0 }
0x1371   :  { %v768_v59 = vpop.f32.mrf.mxu1 }
0x1372   :  { %v781_v60 = vadd.f32 %v768_v59, %v2282_v19  ;;  %v774_v5 = vadd.f32 %v768_v59, %v191_v3 }
0x1373   :  { %v1935_v61 = vpop.f32.mrf.mxu1 }
0x1374   :  { %783 = vrot.lane.b32.xlu1 %v781_v60, %s2150_s17  ;;  %v1756_v6 = vmul.f32 -1.442695, %v774_v5 }
0x1375   :  { %v771_v62 = vpop.f32.mrf.mxu1 }
0x1376   :  { %2087 = vpow2.f32 %v1756_v6 }
0x1377   :  { %v1936_v1 = vpop.f32.mrf.mxu1 }
0x1383   :  { %v2088_v9 = vpop.eup %2087 }
0x1384   :  { %v778_v10 = vadd.f32 1.0, %v2088_v9  ;;  %v194_v9 = vadd.f32 %v2404_v35, %v2291_v26 }
0x1386   :  { %2089 = vrcp.f32 %v778_v10 }
0x1393   :  { %v2090_v11 = vpop.eup %2089 }
0x13e6   :  { %v784_v13 = vpop.permute.xlu1 %783 }
0x13e7   :  { %v786_v14 = vmul.f32 %v2090_v11, %v784_v13 }
0x13e9   :  { %788 = vrot.lane.b32.xlu0 %v786_v14, %s2150_s17 }
0x145b   :  { %v789_v15 = vpop.permute.xlu0 %788 }
0x145c   :  { %v791_v16 = vadd.f32 %v789_v15, %v191_v3 }
0x145e   :  { %2091 = vtanh.f32 %v791_v16 }
0x146b   :  { %v2092_v17 = vpop.eup %2091 }
0x146c   :  { %v793_v18 = vsub.f32 %v2413_v56, %v2092_v17 }
0x146e   :  { %795 = vrot.lane.b32.xlu1 %v793_v18, %s2151_s3 }
0x14e0   :  { %v796_v12 = vpop.permute.xlu1 %795 }
0x14e1   :  { %v798_v20 = vmul.f32 %v2090_v11, %v796_v12 }
0x14e3   :  { %800 = vrot.lane.b32.xlu0 %v798_v20, %s2152_s28 }
0x14e7   :  { %296 = vrot.lane.b32.xlu0 %v2297_v43, %s2150_s17 }
0x14eb   :  { %465 = vrot.lane.b32.xlu0 %v2338_v33, %s2150_s17 }
0x14ef   :  { %1085 = vrot.lane.b32.xlu0 %v1759_v28, %s2150_s17 }
0x1555   :  { %v801_v21 = vpop.permute.xlu0 %800 }
0x1556   :  { %v2434_v23 = vadd.f32 %v2092_v17, %v801_v21 }
0x1558   :  { %v812_v27 = vpack.c.bf16 %v2434_v23, %v2434_v23 }
0x1559   :  { %v297_v43 = vpop.permute.xlu0 %296 }
0x155a   :  { %299 = vst.msk [vmem:[#allocation3] sm:$0xff] %vm218_vm1, %v297_v43  ;;  %814 = vrot.lane.b32.xlu1 %v812_v27, %s2150_s17 }
0x155d   :  { %v466_v33 = vpop.permute.xlu0 %465 }
0x155e   :  { %469 = vst.msk [vmem:[#allocation3 + $0x10] sm:$0xff] %vm218_vm1, %v466_v33  ;;  %380 = vrot.lane.b32.xlu1 %v2318_v8, %s2150_s17  ;;  %v2463_v8 = vld [vmem:[%s2646_s6] sm:$0xff]  }
0x1561   :  { %v910_v32 = vld [vmem:[#allocation3] sm:$0xff]  ;;  %v2485_v42 = vpop.permute.xlu0 %1085 }
0x1562   :  { %550 = vrot.lane.b32.xlu1 %v2372_v63, %s2150_s17 }
0x1565   :  { %v912_v37 = vld [vmem:[#allocation3 + $0x10] sm:$0xff] }
0x15cc   :  { %v815_v30 = vpop.permute.xlu1 %814 }
0x15cd   :  { %1942 = vmatmul.mubr.msk.bf16.vlgmr.msra.gmra.mxu0 %vm218_vm1, %v815_v30 }
0x15ce   :  { %1958 = vmatpush3.bf16.msra.mxu0 %v2456_v29  ;;  %1961 = vmatprep.mubr.msk.bf16.mxu0 %vm2148_vm0, %v2147_v0 }
0x15cf   :  { %1959 = vmatprep.subr.bf16.mxu0 %v2147_v0 }
0x15d0   :  { %v381_v63 = vpop.permute.xlu1 %380 }
0x15d1   :  { %384 = vst.msk [vmem:[#allocation3 + $0x8] sm:$0xff] %vm218_vm1, %v381_v63 }
0x15d2   :  { %1960 = vmatpush3.bf16.msra.mxu0 %v2463_v8 }
0x15d3   :  { %1965 = vmatprep.subr.bf16.mxu0 %v2147_v0 }
0x15d4   :  { %v551_v25 = vpop.permute.xlu1 %550 }
0x15d5   :  { %554 = vst.msk [vmem:[#allocation3 + $0x18] sm:$0xff] %vm218_vm1, %v551_v25  ;;  %1962 = vmatmul.mubr.bf16.vlgmr.msra.gmra.mxu0 %v2149_v7 }
0x15d6   :  { %1966 = vmatpush3.bf16.msra.mxu0 %v2456_v29  ;;  %1969 = vmatprep.mubr.msk.bf16.mxu0 %vm2148_vm0, %v2147_v0 }
0x15d7   :  { %1967 = vmatprep.subr.bf16.mxu0 %v2147_v0 }
0x15d8   :  { %v911_v34 = vld [vmem:[#allocation3 + $0x8] sm:$0xff] }
0x15d9   :  { %v918_v36 = vpack.c.bf16 %v911_v34, %v910_v32 }
0x15da   :  { %1968 = vmatpush3.bf16.msra.mxu0 %v2463_v8 }
0x15db   :  { %1949 = vmatprep.mubr.msk.bf16.mxu1 %vm218_vm1, %v918_v36  ;;  %1981 = vmatprep.subr.bf16.mxu0 %v2147_v0 }
0x15dc   :  { %v913_v38 = vld [vmem:[#allocation3 + $0x18] sm:$0xff] }
0x15dd   :  { %v919_v39 = vpack.c.bf16 %v913_v38, %v912_v37 }
0x15df   :  { %1950 = vmatmul.mubr.msk.bf16.vlgmr.msra.gmra.mxu1 %vm218_vm1, %v919_v39 }
0x15e0   :  { %1974 = vmatpush3.bf16.msra.mxu1 %v2456_v29 }
0x15e1   :  { %1975 = vmatprep.subr.bf16.mxu1 %v2147_v0 }
0x15e4   :  { %1976 = vmatpush3.bf16.msra.mxu1 %v2463_v8 }
0x15e5   :  { %1989 = vmatprep.subr.bf16.mxu1 %v2147_v0 }
0x168d   :  { %v853_v7 = vpop.f32.mrf.mxu0 }
0x168e   :  { %v866_v6 = vadd.f32 %v853_v7, %v2282_v19  ;;  %v859_v10 = vadd.f32 %v853_v7, %v194_v9 }
0x168f   :  { %v1943_v40 = vpop.f32.mrf.mxu0 }
0x1690   :  { %v1758_v11 = vmul.f32 -1.442695, %v859_v10 }
0x1691   :  { %v856_v2 = vpop.f32.mrf.mxu0 }
0x1693   :  { %v1944_v41 = vpop.f32.mrf.mxu0 }
0x1695   :  { %v1072_v44 = vpop.f32.mrf.mxu0 }
0x1696   :  { %v1088_v45 = vadd.f32 %v2485_v42, %v1072_v44 }
0x1697   :  { %v1963_v4 = vpop.f32.mrf.mxu0 }
0x1698   :  { %1090 = vrot.lane.b32.xlu1 %v1088_v45, %s2150_s17 }
0x1699   :  { %v1075_v46 = vpop.f32.mrf.mxu0 }
0x169b   :  { %v1964_v47 = vpop.f32.mrf.mxu0 }
0x169f   :  { %v2489_v48 = vpop.f32.mrf.mxu1 }
0x16a1   :  { %v986_v49 = vpop.f32.mrf.mxu1 }
0x16a2   :  { %v987_v52 = vadd.f32 %v2494_v50, %v986_v49 }
0x16a3   :  { %v2523_v34 = vpop.f32.mrf.mxu1 }
0x16a4   :  { %v1078_v53 = vadd.f32 %v1072_v44, %v987_v52 }
0x16a6   :  { %v1769_v54 = vmul.f32 -1.442695, %v1078_v53 }
0x16a8   :  { %2093 = vpow2.f32 %v1769_v54 }
0x16b5   :  { %v2094_v51 = vpop.eup %2093 }
0x16b6   :  { %v1082_v55 = vadd.f32 1.0, %v2094_v51 }
0x16b8   :  { %2095 = vrcp.f32 %v1082_v55 }
0x16c5   :  { %v2096_v57 = vpop.eup %2095 }
0x170a   :  { %v1091_v58 = vpop.permute.xlu1 %1090 }
0x170b   :  { %v1093_v59 = vmul.f32 %v2096_v57, %v1091_v58 }
0x170d   :  { %1095 = vrot.lane.b32.xlu0 %v1093_v59, %s2150_s17 }
0x177f   :  { %v1096_v60 = vpop.permute.xlu0 %1095 }
0x1780   :  { %v1098_v61 = vadd.f32 %v1096_v60, %v987_v52 }
0x1782   :  { %2097 = vtanh.f32 %v1098_v61 }
0x1783   :  { %2099 = vpow2.f32 %v1758_v11 }
0x178f   :  { %v2098_v62 = vpop.eup %2097 }
0x1790   :  { %v1100_v1 = vsub.f32 0.0, %v2098_v62  ;;  %v2100_v13 = vpop.eup %2099 }
0x1791   :  { %v863_v14 = vadd.f32 1.0, %v2100_v13 }
0x1792   :  { %1102 = vrot.lane.b32.xlu1 %v1100_v1, %s2151_s3 }
0x1793   :  { %2101 = vrcp.f32 %v863_v14 }
0x17a0   :  { %v2102_v18 = vpop.eup %2101 }
0x1804   :  { %v1103_v3 = vpop.permute.xlu1 %1102 }
0x1805   :  { %v1105_v5 = vmul.f32 %v2096_v57, %v1103_v3 }
0x1807   :  { %1107 = vrot.lane.b32.xlu0 %v1105_v5, %s2152_s28 }
0x180b   :  { %868 = vrot.lane.b32.xlu0 %v866_v6, %s2150_s17 }
0x1879   :  { %v1108_v15 = vpop.permute.xlu0 %1107 }
0x187a   :  { %v1110_v16 = vadd.f32 %v2098_v62, %v1108_v15 }
0x187c   :  { %v1112_v17 = vpack.c.bf16 %v1110_v16, %v1110_v16 }
0x187d   :  { %v869_v12 = vpop.permute.xlu0 %868 }
0x187e   :  { %v871_v20 = vmul.f32 %v2102_v18, %v869_v12  ;;  %1114 = vrot.lane.b32.xlu1 %v1112_v17, %s2150_s17 }
0x1880   :  { %873 = vrot.lane.b32.xlu0 %v871_v20, %s2150_s17 }
0x18f0   :  { %v1115_v19 = vpop.permute.xlu1 %1114 }
0x18f1   :  { %1970 = vmatmul.mubr.msk.bf16.vlgmr.msra.gmra.mxu0 %vm218_vm1, %v1115_v19 }
0x18f2   :  { %v874_v26 = vpop.permute.xlu0 %873  ;;  %1982 = vmatpush3.bf16.msra.mxu0 %v2456_v29  ;;  %1985 = vmatprep.mubr.msk.bf16.mxu0 %vm2148_vm0, %v2147_v0 }
0x18f3   :  { %v876_v35 = vadd.f32 %v874_v26, %v194_v9  ;;  %1983 = vmatprep.subr.bf16.mxu0 %v2147_v0 }
0x18f5   :  { %2103 = vtanh.f32 %v876_v35 }
0x18f6   :  { %1984 = vmatpush3.bf16.msra.mxu0 %v2463_v8 }
0x18f7   :  { %1997 = vmatprep.subr.bf16.mxu0 %v2147_v0 }
0x1902   :  { %v2104_v21 = vpop.eup %2103 }
0x1903   :  { %v878_v22 = vsub.f32 %v2434_v23, %v2104_v21 }
0x1905   :  { %880 = vrot.lane.b32.xlu0 %v878_v22, %s2151_s3 }
0x1977   :  { %v881_v24 = vpop.permute.xlu0 %880 }
0x1978   :  { %v883_v27 = vmul.f32 %v2102_v18, %v881_v24 }
0x197a   :  { %885 = vrot.lane.b32.xlu0 %v883_v27, %s2152_s28 }
0x197e   :  { %635 = vrot.lane.b32.xlu0 %v2392_v31, %s2150_s17  ;;  %v989_v31 = vpop.f32.mrf.mxu1 }
0x1982   :  { %805 = vrot.lane.b32.xlu0 %v2434_v23, %s2150_s17  ;;  %v990_v23 = vadd.f32 %v2494_v50, %v989_v31 }
0x19b1   :  { %v1153_v43 = vpop.f32.mrf.mxu0 }
0x19b2   :  { %v1166_v33 = vadd.f32 %v1153_v43, %v2485_v42  ;;  %v1159_v37 = vadd.f32 %v1153_v43, %v990_v23 }
0x19b3   :  { %v1971_v28 = vpop.f32.mrf.mxu0 }
0x19b4   :  { %1168 = vrot.lane.b32.xlu1 %v1166_v33, %s2150_s17  ;;  %v1771_v38 = vmul.f32 -1.442695, %v1159_v37  ;;  %v998_v37 = vadd.f32 %v2523_v34, %v2494_v50 }
0x19b5   :  { %v1156_v30 = vpop.f32.mrf.mxu0 }
0x19b6   :  { %2105 = vpow2.f32 %v1771_v38 }
0x19b7   :  { %v1972_v63 = vpop.f32.mrf.mxu0 }
0x19c3   :  { %v2106_v39 = vpop.eup %2105 }
0x19c4   :  { %v1163_v7 = vadd.f32 1.0, %v2106_v39 }
0x19c6   :  { %2107 = vrcp.f32 %v1163_v7 }
0x19d3   :  { %v2108_v40 = vpop.eup %2107 }
0x19ec   :  { %v886_v25 = vpop.permute.xlu0 %885 }
0x19ed   :  { %v888_v52 = vadd.f32 %v2104_v21, %v886_v25 }
0x19f0   :  { %v636_v32 = vpop.permute.xlu0 %635 }
0x19f1   :  { %639 = vst.msk [vmem:[#allocation3 + $0x20] sm:$0xff] %vm218_vm1, %v636_v32 }
0x19f4   :  { %v806_v36 = vpop.permute.xlu0 %805 }
0x19f5   :  { %809 = vst.msk [vmem:[#allocation3 + $0x30] sm:$0xff] %vm218_vm1, %v806_v36 }
0x19f8   :  { %v914_v58 = vld [vmem:[#allocation3 + $0x20] sm:$0xff] }
0x1a26   :  { %v1169_v2 = vpop.permute.xlu1 %1168 }
0x1a27   :  { %v1171_v41 = vmul.f32 %v2108_v40, %v1169_v2 }
0x1a29   :  { %1173 = vrot.lane.b32.xlu1 %v1171_v41, %s2150_s17 }
0x1a9b   :  { %v1174_v44 = vpop.permute.xlu1 %1173 }
0x1a9c   :  { %v1176_v45 = vadd.f32 %v1174_v44, %v990_v23 }
0x1a9e   :  { %2109 = vtanh.f32 %v1176_v45 }
0x1aab   :  { %v2110_v4 = vpop.eup %2109 }
0x1aac   :  { %v1178_v46 = vsub.f32 %v1110_v16, %v2110_v4  ;;  %v995_v16 = vadd.f32 %v2489_v48, %v2494_v50 }
0x1aae   :  { %1180 = vrot.lane.b32.xlu1 %v1178_v46, %s2151_s3 }
0x1b20   :  { %v1181_v47 = vpop.permute.xlu1 %1180 }
0x1b21   :  { %v1183_v49 = vmul.f32 %v2108_v40, %v1181_v47 }
0x1b23   :  { %1185 = vrot.lane.b32.xlu1 %v1183_v49, %s2152_s28 }
0x1b27   :  { %720 = vrot.lane.b32.xlu1 %v2413_v56, %s2150_s17  ;;  %v916_v56 = vld [vmem:[#allocation3 + $0x30] sm:$0xff] }
0x1b2b   :  { %890 = vrot.lane.b32.xlu1 %v888_v52, %s2150_s17 }
0x1b95   :  { %v1186_v53 = vpop.permute.xlu1 %1185 }
0x1b96   :  { %v1188_v54 = vadd.f32 %v2110_v4, %v1186_v53 }
0x1b98   :  { %v1190_v51 = vpack.c.bf16 %v1188_v54, %v1188_v54 }
0x1b99   :  { %v721_v55 = vpop.permute.xlu1 %720 }
0x1b9a   :  { %724 = vst.msk [vmem:[#allocation3 + $0x28] sm:$0xff] %vm218_vm1, %v721_v55  ;;  %1192 = vrot.lane.b32.xlu0 %v1190_v51, %s2150_s17 }
0x1b9d   :  { %v891_v57 = vpop.permute.xlu1 %890 }
0x1b9e   :  { %894 = vst.msk [vmem:[#allocation3 + $0x38] sm:$0xff] %vm218_vm1, %v891_v57 }
0x1ba1   :  { %v915_v59 = vld [vmem:[#allocation3 + $0x28] sm:$0xff] }
0x1ba2   :  { %v920_v60 = vpack.c.bf16 %v915_v59, %v914_v58 }
0x1ba4   :  { %1953 = vmatprep.mubr.msk.bf16.mxu1 %vm218_vm1, %v920_v60 }
0x1ba5   :  { %v917_v61 = vld [vmem:[#allocation3 + $0x38] sm:$0xff] }
0x1ba6   :  { %v921_v62 = vpack.c.bf16 %v917_v61, %v916_v56 }
0x1ba8   :  { %1954 = vmatmul.mubr.msk.bf16.gmra.mxu1 %vm218_vm1, %v921_v62 }
0x1ba9   :  { %1977 = vmatprep.mubr.msk.bf16.mxu1 %vm2148_vm0, %v2147_v0 }
0x1c0c   :  { %v1193_v1 = vpop.permute.xlu0 %1192 }
0x1c0d   :  { %1978 = vmatmul.mubr.msk.bf16.vlgmr.msra.gmra.mxu1 %vm218_vm1, %v1193_v1 }
0x1c0e   :  { %1990 = vmatpush3.bf16.msra.mxu1 %v2456_v29  ;;  %1993 = vmatprep.mubr.msk.bf16.mxu1 %vm2148_vm0, %v2147_v0 }
0x1c0f   :  { %1991 = vmatprep.subr.bf16.mxu1 %v2147_v0 }
0x1c12   :  { %1992 = vmatpush3.bf16.msra.mxu1 %v2463_v8 }
0x1c13   :  { %2005 = vmatprep.subr.bf16.mxu1 %v2147_v0 }
0x1c68   :  { %v2547_v3 = vpop.f32.mrf.mxu1 }
0x1c6a   :  { %v2549_v5 = vpop.f32.mrf.mxu1 }
0x1c6b   :  { %v1003_v56 = vadd.f32 %v2494_v50, %v2549_v5 }
0x1c6c   :  { %v2551_v6 = vpop.f32.mrf.mxu1 }
0x1c6e   :  { %v2553_v9 = vpop.f32.mrf.mxu1 }
0x1ccd   :  { %v1231_v10 = vpop.f32.mrf.mxu1 }
0x1cce   :  { %v1244_v11 = vadd.f32 %v1231_v10, %v2485_v42  ;;  %v1237_v17 = vadd.f32 %v1231_v10, %v995_v16 }
0x1ccf   :  { %v1979_v13 = vpop.f32.mrf.mxu1 }
0x1cd0   :  { %1246 = vrot.lane.b32.xlu1 %v1244_v11, %s2150_s17  ;;  %v1773_v18 = vmul.f32 -1.442695, %v1237_v17 }
0x1cd1   :  { %v1234_v14 = vpop.f32.mrf.mxu1 }
0x1cd2   :  { %2111 = vpow2.f32 %v1773_v18 }
0x1cd3   :  { %v1980_v15 = vpop.f32.mrf.mxu1 }
0x1cdf   :  { %v2112_v12 = vpop.eup %2111 }
0x1ce0   :  { %v1241_v20 = vadd.f32 1.0, %v2112_v12 }
0x1ce2   :  { %2113 = vrcp.f32 %v1241_v20 }
0x1cef   :  { %v2114_v19 = vpop.eup %2113 }
0x1d42   :  { %v1247_v26 = vpop.permute.xlu1 %1246 }
0x1d43   :  { %v1249_v35 = vmul.f32 %v2114_v19, %v1247_v26 }
0x1d45   :  { %1251 = vrot.lane.b32.xlu0 %v1249_v35, %s2150_s17 }
0x1db7   :  { %v1252_v21 = vpop.permute.xlu0 %1251 }
0x1db8   :  { %v1254_v22 = vadd.f32 %v1252_v21, %v995_v16 }
0x1dba   :  { %2115 = vtanh.f32 %v1254_v22 }
0x1dc7   :  { %v2116_v24 = vpop.eup %2115 }
0x1dc8   :  { %v1256_v27 = vsub.f32 %v1188_v54, %v2116_v24 }
0x1dca   :  { %1258 = vrot.lane.b32.xlu1 %v1256_v27, %s2151_s3 }
0x1e3c   :  { %v1259_v43 = vpop.permute.xlu1 %1258 }
0x1e3d   :  { %v1261_v48 = vmul.f32 %v2114_v19, %v1259_v43 }
0x1e3f   :  { %1263 = vrot.lane.b32.xlu0 %v1261_v48, %s2152_s28  ;;  %v1006_v48 = vadd.f32 %v2494_v50, %v2553_v9 }
0x1eb1   :  { %v1264_v33 = vpop.permute.xlu0 %1263 }
0x1eb2   :  { %v1266_v28 = vadd.f32 %v2116_v24, %v1264_v33 }
0x1eb4   :  { %v1268_v30 = vpack.c.bf16 %v1266_v28, %v1266_v28 }
0x1eb6   :  { %1270 = vrot.lane.b32.xlu1 %v1268_v30, %s2150_s17 }
0x1f28   :  { %v1271_v63 = vpop.permute.xlu1 %1270 }
0x1f29   :  { %1986 = vmatmul.mubr.msk.bf16.vlgmr.msra.gmra.mxu0 %vm218_vm1, %v1271_v63 }
0x1f2a   :  { %1998 = vmatpush3.bf16.msra.mxu0 %v2456_v29  ;;  %2001 = vmatprep.mubr.msk.bf16.mxu0 %vm2148_vm0, %v2147_v0 }
0x1f2b   :  { %1999 = vmatprep.subr.bf16.mxu0 %v2147_v0 }
0x1f2e   :  { %2000 = vmatpush3.bf16.msra.mxu0 %v2463_v8 }
0x1f2f   :  { %2013 = vmatprep.subr.bf16.mxu0 %v2147_v0 }
0x1fe9   :  { %v1309_v25 = vpop.f32.mrf.mxu0 }
0x1fea   :  { %v1322_v32 = vadd.f32 %v1309_v25, %v2485_v42  ;;  %v1315_v38 = vadd.f32 %v1309_v25, %v998_v37 }
0x1feb   :  { %v1987_v36 = vpop.f32.mrf.mxu0 }
0x1fec   :  { %1324 = vrot.lane.b32.xlu0 %v1322_v32, %s2150_s17  ;;  %v1775_v39 = vmul.f32 -1.442695, %v1315_v38 }
0x1fed   :  { %v1312_v31 = vpop.f32.mrf.mxu0 }
0x1fee   :  { %2117 = vpow2.f32 %v1775_v39 }
0x1fef   :  { %v1988_v23 = vpop.f32.mrf.mxu0 }
0x1ffb   :  { %v2118_v7 = vpop.eup %2117 }
0x1ffc   :  { %v1319_v40 = vadd.f32 1.0, %v2118_v7 }
0x1ffe   :  { %2119 = vrcp.f32 %v1319_v40 }
0x200b   :  { %v2120_v2 = vpop.eup %2119 }
0x205e   :  { %v1325_v41 = vpop.permute.xlu0 %1324 }
0x205f   :  { %v1327_v44 = vmul.f32 %v2120_v2, %v1325_v41 }
0x2061   :  { %1329 = vrot.lane.b32.xlu1 %v1327_v44, %s2150_s17 }
0x20d3   :  { %v1330_v45 = vpop.permute.xlu1 %1329 }
0x20d4   :  { %v1332_v4 = vadd.f32 %v1330_v45, %v998_v37 }
0x20d6   :  { %2121 = vtanh.f32 %v1332_v4 }
0x20e3   :  { %v2122_v46 = vpop.eup %2121 }
0x20e4   :  { %v1334_v47 = vsub.f32 %v1266_v28, %v2122_v46 }
0x20e6   :  { %1336 = vrot.lane.b32.xlu0 %v1334_v47, %s2151_s3 }
0x2158   :  { %v1337_v49 = vpop.permute.xlu0 %1336 }
0x2159   :  { %v1339_v34 = vmul.f32 %v2120_v2, %v1337_v49 }
0x215b   :  { %1341 = vrot.lane.b32.xlu1 %v1339_v34, %s2152_s28 }
0x21cd   :  { %v1342_v52 = vpop.permute.xlu1 %1341 }
0x21ce   :  { %v1344_v53 = vadd.f32 %v2122_v46, %v1342_v52  ;;  %v1011_v46 = vadd.f32 %v2547_v3, %v2494_v50 }
0x21d0   :  { %v1346_v54 = vpack.c.bf16 %v1344_v53, %v1344_v53 }
0x21d2   :  { %1348 = vrot.lane.b32.xlu0 %v1346_v54, %s2150_s17 }
0x2244   :  { %v1349_v51 = vpop.permute.xlu0 %1348 }
0x2245   :  { %1994 = vmatmul.mubr.msk.bf16.vlgmr.msra.gmra.mxu1 %vm218_vm1, %v1349_v51 }
0x2246   :  { %2006 = vmatpush3.bf16.msra.mxu1 %v2456_v29  ;;  %2009 = vmatprep.mubr.msk.bf16.mxu1 %vm2148_vm0, %v2147_v0 }
0x2247   :  { %2007 = vmatprep.subr.bf16.mxu1 %v2147_v0 }
0x224a   :  { %2008 = vmatpush3.bf16.msra.mxu1 %v2463_v8 }
0x224b   :  { %2021 = vmatprep.subr.bf16.mxu1 %v2147_v0 }
0x2305   :  { %v1387_v55 = vpop.f32.mrf.mxu1 }
0x2306   :  { %v1400_v57 = vadd.f32 %v1387_v55, %v2485_v42  ;;  %v1393_v61 = vadd.f32 %v1387_v55, %v1003_v56 }
0x2307   :  { %v1995_v58 = vpop.f32.mrf.mxu1 }
0x2308   :  { %1402 = vrot.lane.b32.xlu1 %v1400_v57, %s2150_s17  ;;  %v1777_v62 = vmul.f32 -1.442695, %v1393_v61 }
0x2309   :  { %v1390_v59 = vpop.f32.mrf.mxu1 }
0x230a   :  { %2123 = vpow2.f32 %v1777_v62 }
0x230b   :  { %v1996_v60 = vpop.f32.mrf.mxu1 }
0x2317   :  { %v2124_v1 = vpop.eup %2123 }
0x2318   :  { %v1397_v10 = vadd.f32 1.0, %v2124_v1 }
0x231a   :  { %2125 = vrcp.f32 %v1397_v10 }
0x2327   :  { %v2126_v11 = vpop.eup %2125 }
0x237a   :  { %v1403_v13 = vpop.permute.xlu1 %1402 }
0x237b   :  { %v1405_v14 = vmul.f32 %v2126_v11, %v1403_v13 }
0x237d   :  { %1407 = vrot.lane.b32.xlu0 %v1405_v14, %s2150_s17 }
0x23ef   :  { %v1408_v15 = vpop.permute.xlu0 %1407 }
0x23f0   :  { %v1410_v16 = vadd.f32 %v1408_v15, %v1003_v56 }
0x23f2   :  { %2127 = vtanh.f32 %v1410_v16  ;;  %v1014_v16 = vadd.f32 %v2551_v6, %v2494_v50  ;;  %v2049_v50 = vld [vmem:[%s2650_s9 + $0x8] sm:$0xff]   ;;  %v2050_v6 = vld [vmem:[%s2650_s9] sm:$0xff]  }
0x23ff   :  { %v2128_v17 = vpop.eup %2127 }
0x2400   :  { %v1412_v18 = vsub.f32 %v1344_v53, %v2128_v17 }
0x2402   :  { %1414 = vrot.lane.b32.xlu1 %v1412_v18, %s2151_s3 }
0x2474   :  { %v1415_v12 = vpop.permute.xlu1 %1414 }
0x2475   :  { %v1417_v5 = vmul.f32 %v2126_v11, %v1415_v12 }
0x2477   :  { %1419 = vrot.lane.b32.xlu0 %v1417_v5, %s2152_s28 }
0x24e9   :  { %v1420_v20 = vpop.permute.xlu0 %1419 }
0x24ea   :  { %v1422_v19 = vadd.f32 %v2128_v17, %v1420_v20 }
0x24ec   :  { %v1424_v26 = vpack.c.bf16 %v1422_v19, %v1422_v19 }
0x24ee   :  { %1426 = vrot.lane.b32.xlu1 %v1424_v26, %s2150_s17 }
0x2560   :  { %v1427_v35 = vpop.permute.xlu1 %1426 }
0x2561   :  { %2002 = vmatmul.mubr.msk.bf16.vlgmr.msra.gmra.mxu0 %vm218_vm1, %v1427_v35 }
0x2562   :  { %2014 = vmatpush3.bf16.msra.mxu0 %v2456_v29  ;;  %2017 = vmatprep.mubr.msk.bf16.mxu0 %vm2148_vm0, %v2147_v0 }
0x2563   :  { %2015 = vmatprep.subr.bf16.mxu0 %v2147_v0 }
0x2566   :  { %2016 = vmatpush3.bf16.msra.mxu0 %v2463_v8 }
0x2621   :  { %v1465_v21 = vpop.f32.mrf.mxu0 }
0x2622   :  { %v1478_v22 = vadd.f32 %v1465_v21, %v2485_v42  ;;  %v1471_v33 = vadd.f32 %v1465_v21, %v1006_v48 }
0x2623   :  { %v2003_v24 = vpop.f32.mrf.mxu0 }
0x2624   :  { %1480 = vrot.lane.b32.xlu0 %v1478_v22, %s2150_s17  ;;  %v1779_v29 = vmul.f32 -1.442695, %v1471_v33 }
0x2625   :  { %v1468_v27 = vpop.f32.mrf.mxu0 }
0x2626   :  { %2129 = vpow2.f32 %v1779_v29 }
0x2627   :  { %v2004_v43 = vpop.f32.mrf.mxu0 }
0x2633   :  { %v2130_v28 = vpop.eup %2129 }
0x2634   :  { %v1475_v30 = vadd.f32 1.0, %v2130_v28  ;;  %v1784_v28 = vld [vmem:[%s2651_s10] ss:$0 sm:$0xff] }
0x2636   :  { %2131 = vrcp.f32 %v1475_v30 }
0x2643   :  { %v2132_v63 = vpop.eup %2131 }
0x2696   :  { %v1481_v25 = vpop.permute.xlu0 %1480 }
0x2697   :  { %v1483_v8 = vmul.f32 %v2132_v63, %v1481_v25 }
0x2699   :  { %1485 = vrot.lane.b32.xlu1 %v1483_v8, %s2150_s17 }
0x270b   :  { %v1486_v32 = vpop.permute.xlu1 %1485 }
0x270c   :  { %v1488_v36 = vadd.f32 %v1486_v32, %v1006_v48 }
0x270e   :  { %2133 = vtanh.f32 %v1488_v36 }
0x271b   :  { %v2134_v31 = vpop.eup %2133 }
0x271c   :  { %v1490_v23 = vsub.f32 %v1422_v19, %v2134_v31 }
0x271e   :  { %1492 = vrot.lane.b32.xlu0 %v1490_v23, %s2151_s3 }
0x2790   :  { %v1493_v37 = vpop.permute.xlu0 %1492 }
0x2791   :  { %v1495_v9 = vmul.f32 %v2132_v63, %v1493_v37 }
0x2793   :  { %1497 = vrot.lane.b32.xlu1 %v1495_v9, %s2152_s28 }
0x2805   :  { %v1498_v38 = vpop.permute.xlu1 %1497 }
0x2806   :  { %v1500_v39 = vadd.f32 %v2134_v31, %v1498_v38 }
0x2808   :  { %v1502_v7 = vpack.c.bf16 %v1500_v39, %v1500_v39 }
0x280a   :  { %1504 = vrot.lane.b32.xlu0 %v1502_v7, %s2150_s17 }
0x287c   :  { %v1505_v40 = vpop.permute.xlu0 %1504 }
0x287d   :  { %2010 = vmatmul.mubr.msk.bf16.vlgmr.msra.gmra.mxu1 %vm218_vm1, %v1505_v40 }
0x287e   :  { %2025 = vmatprep.mubr.msk.bf16.mxu1 %vm2148_vm0, %v2147_v0  ;;  %2022 = vmatpush3.bf16.msra.mxu1 %v2049_v50 }
0x287f   :  { %2023 = vmatprep.subr.bf16.mxu1 %v2147_v0 }
0x2882   :  { %2024 = vmatpush3.bf16.msra.mxu1 %v2050_v6 }
0x293d   :  { %v1543_v2 = vpop.f32.mrf.mxu1 }
0x293e   :  { %v1556_v41 = vadd.f32 %v1543_v2, %v2485_v42  ;;  %v1549_v47 = vadd.f32 %v1543_v2, %v1011_v46 }
0x293f   :  { %v2011_v44 = vpop.f32.mrf.mxu1 }
0x2940   :  { %1558 = vrot.lane.b32.xlu1 %v1556_v41, %s2150_s17  ;;  %v1781_v49 = vmul.f32 -1.442695, %v1549_v47 }
0x2941   :  { %v1546_v45 = vpop.f32.mrf.mxu1 }
0x2942   :  { %2135 = vpow2.f32 %v1781_v49 }
0x2943   :  { %v2012_v4 = vpop.f32.mrf.mxu1 }
0x294f   :  { %v2136_v34 = vpop.eup %2135 }
0x2950   :  { %v1553_v52 = vadd.f32 1.0, %v2136_v34 }
0x2952   :  { %2137 = vrcp.f32 %v1553_v52 }
0x295f   :  { %v2138_v53 = vpop.eup %2137 }
0x29b2   :  { %v1559_v54 = vpop.permute.xlu1 %1558 }
0x29b3   :  { %v1561_v51 = vmul.f32 %v2138_v53, %v1559_v54 }
0x29b5   :  { %1563 = vrot.lane.b32.xlu0 %v1561_v51, %s2150_s17 }
0x2a27   :  { %v1564_v55 = vpop.permute.xlu0 %1563 }
0x2a28   :  { %v1566_v57 = vadd.f32 %v1564_v55, %v1011_v46 }
0x2a2a   :  { %2139 = vtanh.f32 %v1566_v57 }
0x2a37   :  { %v2140_v58 = vpop.eup %2139 }
0x2a38   :  { %v1568_v59 = vsub.f32 %v1500_v39, %v2140_v58 }
0x2a3a   :  { %1570 = vrot.lane.b32.xlu1 %v1568_v59, %s2151_s3 }
0x2aac   :  { %v1571_v60 = vpop.permute.xlu1 %1570 }
0x2aad   :  { %v1573_v3 = vmul.f32 %v2138_v53, %v1571_v60 }
0x2aaf   :  { %1575 = vrot.lane.b32.xlu0 %v1573_v3, %s2152_s28 }
0x2b21   :  { %v1576_v56 = vpop.permute.xlu0 %1575 }
0x2b22   :  { %v1578_v61 = vadd.f32 %v2140_v58, %v1576_v56 }
0x2b24   :  { %v1580_v62 = vpack.c.bf16 %v1578_v61, %v1578_v61 }
0x2b26   :  { %1582 = vrot.lane.b32.xlu1 %v1580_v62, %s2150_s17 }
0x2b98   :  { %v1583_v1 = vpop.permute.xlu1 %1582 }
0x2b99   :  { %2018 = vmatmul.mubr.msk.bf16.vlgmr.msra.gmra.mxu0 %vm218_vm1, %v1583_v1 }
0x2c59   :  { %v1621_v10 = vpop.f32.mrf.mxu0 }
0x2c5a   :  { %v1634_v11 = vadd.f32 %v1621_v10, %v2485_v42  ;;  %v1627_v17 = vadd.f32 %v1621_v10, %v1014_v16 }
0x2c5b   :  { %v2019_v13 = vpop.f32.mrf.mxu0 }
0x2c5c   :  { %1636 = vrot.lane.b32.xlu0 %v1634_v11, %s2150_s17  ;;  %v1783_v18 = vmul.f32 -1.442695, %v1627_v17 }
0x2c5d   :  { %v1624_v14 = vpop.f32.mrf.mxu0 }
0x2c5e   :  { %2141 = vpow2.f32 %v1783_v18 }
0x2c5f   :  { %v2020_v15 = vpop.f32.mrf.mxu0 }
0x2c6b   :  { %v2142_v12 = vpop.eup %2141 }
0x2c6c   :  { %v1631_v5 = vadd.f32 1.0, %v2142_v12 }
0x2c6e   :  { %2143 = vrcp.f32 %v1631_v5 }
0x2c7b   :  { %v2144_v20 = vpop.eup %2143 }
0x2cce   :  { %v1637_v19 = vpop.permute.xlu0 %1636 }
0x2ccf   :  { %v1639_v26 = vmul.f32 %v2144_v20, %v1637_v19 }
0x2cd1   :  { %1641 = vrot.lane.b32.xlu1 %v1639_v26, %s2150_s17 }
0x2d43   :  { %v1642_v42 = vpop.permute.xlu1 %1641 }
0x2d44   :  { %v1644_v35 = vadd.f32 %v1642_v42, %v1014_v16 }
0x2d46   :  { %2145 = vtanh.f32 %v1644_v35 }
0x2d53   :  { %v2146_v21 = vpop.eup %2145 }
0x2d54   :  { %v1646_v22 = vsub.f32 %v1578_v61, %v2146_v21 }
0x2d56   :  { %1648 = vrot.lane.b32.xlu0 %v1646_v22, %s2151_s3 }
0x2dc8   :  { %v1649_v24 = vpop.permute.xlu0 %1648 }
0x2dc9   :  { %v1651_v27 = vmul.f32 %v2144_v20, %v1649_v24 }
0x2dcb   :  { %1653 = vrot.lane.b32.xlu1 %v1651_v27, %s2152_s28 }
0x2e3d   :  { %v1654_v43 = vpop.permute.xlu1 %1653 }
0x2e3e   :  { %v1656_v48 = vadd.f32 %v2146_v21, %v1654_v43 }
0x2e40   :  { %v1657_v33 = vpack.c.bf16 %v1656_v48, %v1656_v48 }
0x2e42   :  { %1670 = vrot.lane.b32.xlu0 %v1657_v33, %s2150_s17 }
0x2eb4   :  { %v1671_v29 = vpop.permute.xlu0 %1670 }
0x2eb5   :  { %2026 = vmatmul.mubr.msk.bf16.vlgmr.msra.gmra.mxu1 %vm218_vm1, %v1671_v29 }
0x2f75   :  { %v1721_v30 = vpop.f32.mrf.mxu1 }
0x2f76   :  { %v1722_v63 = vadd.f32 %v1784_v28, %v1721_v30 }
0x2f77   :  { %v2027_v0 = vpop.f32.mrf.mxu1 }
0x2f78   :  { %1727 = vst [vmem:[%s2652_s11] sm:$0xff] %v1722_v63 }
0x2f79   :  { %v1724_v25 = vpop.f32.mrf.mxu1 }
0x2f7b   :  { %v2028_v8 = vpop.f32.mrf.mxu1 }

</bundles_post_ra>
